<compile_context>
chip_gen: v5e
topology: v5e:2x2
jax: 0.10.0
libtpu: 0.0.40
codegen_flags: <defaults>
</compile_context>

<pallas_src>
import functools
import math

import jax
import jax.numpy as jnp
from jax import lax
from jax.experimental import pallas as pl
from jax.experimental.pallas import tpu as pltpu


def _volt_kernel(ab_ref, xrow_ref, xcol_ref, o_ref, *, point_dim, strip):
    # ab_ref   : SMEM (2,) = [a, b]  with  lambda^2 * IR == 1 / (a + b*norm)
    # xrow_ref : VMEM (1, TM, D) row tile of x      (output i axis)
    # xcol_ref : VMEM (1, D, TN) column tile of x^T (output j axis)
    # o_ref    : VMEM (1, TM, TN)
    TM, D = xrow_ref.shape[1], xrow_ref.shape[2]
    TN = xcol_ref.shape[2]
    num_chunks = (D + point_dim - 1) // point_dim

    a = ab_ref[0]
    b = ab_ref[1]

    xjt = xcol_ref[0].astype(jnp.float32)        # (D, TN): tiny, loaded once

    SM = strip
    nstrips = TM // SM

    def strip_body(s, carry):
        mi = pl.multiple_of(s * SM, SM)
        xi = xrow_ref[0, pl.ds(mi, SM), :].astype(jnp.float32)   # (SM, D)

        k_sum = jnp.zeros((SM, TN), jnp.float32)
        run_prod = jnp.ones((SM, TN), jnp.float32)

        for c in range(num_chunks):              # static unroll, D is small
            d0 = c * point_dim
            d1 = min(d0 + point_dim, D)
            dist2 = jnp.zeros((SM, TN), jnp.float32)
            for d in range(d0, d1):
                # (SM,1) - (1,TN) broadcast; exact zeros on the diagonal
                # (avoids Gram-identity cancellation amplified by 1/(a+b*norm)).
                diff = xi[:, d:d + 1] - xjt[d:d + 1, :]
                dist2 = dist2 + diff * diff
            norm = jnp.sqrt(dist2)
            den = a + b * norm                   # == (1 - tau^2*(M_Kinf-norm)) / lambda^2
            recip = pl.reciprocal(den, approx=True)
            recip = recip * (2.0 - den * recip)  # one NR step -> ~f32-exact
            run_prod = run_prod * recip          # running lambda^(2m) * prod IR_k
            k_sum = k_sum + run_prod

        # Full-lane-width store (TN multiple of 128) -> unmasked vst.
        o_ref[0, pl.ds(mi, SM), :] = (1.0 + k_sum).astype(o_ref.dtype)
        return carry

    lax.fori_loop(0, nstrips, strip_body, 0, unroll=True)


def _round_up(a, b):
    return ((a + b - 1) // b) * b


def voltreservoir_kernel_layer(x, params, *, point_dim=3, max_tile=256):
    """x: (B, N, D) float32; params: (3,) = [M_Kinf, tau, lambda]. Returns (B, N, N)."""
    B, N, D = x.shape

    # Minimal padding (compute is O(Np^2)): pad N to a multiple of 128 only,
    # then pick the largest 128-multiple tile <= max_tile dividing Np.
    Np = _round_up(N, 128)
    T = 128
    for cand in (256, 128):                      # never 512/1024 on the op-by-op path
        if cand <= max_tile and Np % cand == 0:
            T = cand
            break

    # Strip height so a (SM, T) f32 strip is ~8 vregs -> the whole chain stays
    # register-resident (3 persistent + a couple transient arrays < 64 vregs).
    SM = max(8, min(64, 8192 // T))
    SM = min(SM, T)

    x = x.astype(jnp.float32)
    x_pad = x if Np == N else jnp.pad(x, ((0, 0), (0, Np - N), (0, 0)))
    x_t = jnp.swapaxes(x_pad, 1, 2)              # (B, D, Np): transposed once in XLA

    # Fold the scalar algebra once (one-time XLA scalar math, lands in SMEM):
    #   lambda^2 / (1 - tau^2*(M_Kinf - norm)) == 1 / (a + b*norm)
    m_kinf = params[0]
    tau2 = params[1] * params[1]
    lam2 = params[2] * params[2]
    ab = jnp.stack([(1.0 - tau2 * m_kinf) / lam2, tau2 / lam2]).astype(jnp.float32)

    num_chunks = (D + point_dim - 1) // point_dim
    cost = pl.CostEstimate(
        flops=B * Np * Np * (3 * D + 9 * num_chunks),
        transcendentals=B * Np * Np * 2 * num_chunks,   # sqrt + reciprocal per chunk
        bytes_accessed=4 * (B * Np * Np + 2 * B * Np * D),
    )

    out = pl.pallas_call(
        functools.partial(_volt_kernel, point_dim=point_dim, strip=SM),
        out_shape=jax.ShapeDtypeStruct((B, Np, Np), jnp.float32),
        grid=(B, Np // T, Np // T),
        in_specs=[
            pl.BlockSpec(memory_space=pltpu.MemorySpace.SMEM),    # folded scalars
            pl.BlockSpec((1, T, D), lambda b, i, j: (b, i, 0)),   # row tile (const in j)
            pl.BlockSpec((1, D, T), lambda b, i, j: (b, 0, j)),   # column tile of x^T
        ],
        out_specs=pl.BlockSpec((1, T, T), lambda b, i, j: (b, i, j)),
        compiler_params=pltpu.CompilerParams(
            dimension_semantics=("parallel", "parallel", "parallel")),
        cost_estimate=cost,
    )(ab, x_pad, x_t)

    if Np != N:
        out = out[:, :N, :N]
    return out


if __name__ == "__main__":
    key = jax.random.PRNGKey(0)
    B, N, D = 2, 96, 6
    point_dim = 3
    x = jax.random.normal(key, (B, N, D), dtype=jnp.float32)

    # Deterministic parameter init mirroring the PyTorch module defaults:
    # M_Kinf = 1, tau = sqrt(1/M_Kinf^2)*0.99, lambda = sqrt(1 - tau^2*M_Kinf^2)*0.99
    m_kinf = 1.0
    tau = math.sqrt(1.0 / m_kinf ** 2) * 0.99
    lam = math.sqrt(1.0 - tau ** 2 * m_kinf ** 2) * 0.99
    params = jnp.array([m_kinf, tau, lam], dtype=jnp.float32)

    out = voltreservoir_kernel_layer(x, params, point_dim=point_dim)
    out = jax.block_until_ready(out)

    # Pure-JAX reference mirroring the PyTorch forward exactly (exact divides).
    vct_h = jnp.swapaxes(x, -1, -2)[:, None, :, :]                 # (B, 1, D, N)
    chunks = [(s, min(s + point_dim, D)) for s in range(0, D, point_dim)]
    inner = []
    for (s, e) in chunks:
        diff = vct_h[..., s:e, :] - x[..., s:e][..., None]         # (B, N, e-s, N)
        norm = jnp.sqrt(jnp.sum(diff * diff, axis=-2))             # (B, N, N)
        inner.append(m_kinf - norm)
    inner_prod = jnp.stack(inner, axis=0)                          # (K, B, N, N)
    inner_res = 1.0 / (1.0 - tau ** 2 * inner_prod)
    K = inner_res.shape[0]
    k_sum = lam ** 2 * jnp.prod(inner_res[0:1], axis=0)
    for k in range(K - 1):
        k_sum = k_sum + lam ** (2 * (k + 2)) * jnp.prod(inner_res[0:k + 2], axis=0)
    ref = 1.0 + k_sum

    assert out.shape == (B, N, N), out.shape
    err = float(jnp.max(jnp.abs(out - ref)))
    assert jnp.allclose(out, ref, atol=1e-4, rtol=1e-4), err
    print("KERNEL_OK")
</pallas_src>

<mosaic_0001>
module attributes {stable_mosaic.version = 11 : i64} {
  func.func @_volt_kernel(%arg0: i32, %arg1: i32, %arg2: i32, %arg3: memref<2xf32, #tpu.memory_space<smem>>, %arg4: memref<1x128x6xf32, #tpu.memory_space<vmem>>, %arg5: memref<1x6x128xf32, #tpu.memory_space<vmem>>, %arg6: memref<1x128x128xf32, #tpu.memory_space<vmem>>) attributes {dimension_semantics = [#tpu.dimension_semantics<parallel>, #tpu.dimension_semantics<parallel>, #tpu.dimension_semantics<parallel>], iteration_bounds = array<i64: 2, 1, 1>, scalar_prefetch = 0 : i64, scratch_operands = 0 : i64, tpu.core_type = #tpu.core_type<tc>, window_params = [{transform_indices = @transform_0, window_bounds = array<i64: 2>}, {transform_indices = @transform_1, window_bounds = array<i64: 1, 128, 6>}, {transform_indices = @transform_2, window_bounds = array<i64: 1, 6, 128>}, {transform_indices = @transform_3, window_bounds = array<i64: 1, 128, 128>}]} {
    %c0 = arith.constant 0 : index
    %0 = memref.load %arg3[%c0] : memref<2xf32, #tpu.memory_space<smem>>
    %c1 = arith.constant 1 : index
    %1 = memref.load %arg3[%c1] : memref<2xf32, #tpu.memory_space<smem>>
    %c0_0 = arith.constant 0 : index
    %c0_1 = arith.constant 0 : index
    %c0_2 = arith.constant 0 : index
    %2 = vector.load %arg5[%c0_0, %c0_1, %c0_2] : memref<1x6x128xf32, #tpu.memory_space<vmem>>, vector<1x6x128xf32>
    %3 = vector.shape_cast %2 : vector<1x6x128xf32> to vector<6x128xf32>
    %c0_i32 = arith.constant 0 : i32
    %c64_i32 = arith.constant 64 : i32
    %4 = arith.muli %c0_i32, %c64_i32 : i32
    %5 = tpu.assume_multiple %4, 64 : i32
    %c0_3 = arith.constant 0 : index
    %6 = arith.index_cast %5 : i32 to index
    %c0_4 = arith.constant 0 : index
    %7 = vector.load %arg4[%c0_3, %6, %c0_4] : memref<1x128x6xf32, #tpu.memory_space<vmem>>, vector<1x64x6xf32>
    %8 = vector.shape_cast %7 : vector<1x64x6xf32> to vector<64x6xf32>
    %cst = arith.constant 0.000000e+00 : f32
    %9 = vector.broadcast %cst : f32 to vector<64x128xf32>
    %cst_5 = arith.constant 1.000000e+00 : f32
    %10 = vector.broadcast %cst_5 : f32 to vector<64x128xf32>
    %cst_6 = arith.constant 0.000000e+00 : f32
    %11 = vector.broadcast %cst_6 : f32 to vector<64x128xf32>
    %12 = vector.extract_strided_slice %8 {offsets = [0, 0], sizes = [64, 1], strides = [1, 1]} : vector<64x6xf32> to vector<64x1xf32>
    %13 = vector.extract_strided_slice %3 {offsets = [0, 0], sizes = [1, 128], strides = [1, 1]} : vector<6x128xf32> to vector<1x128xf32>
    %14 = vector.broadcast %12 : vector<64x1xf32> to vector<64x128xf32>
    %15 = vector.broadcast %13 : vector<1x128xf32> to vector<64x128xf32>
    %16 = arith.subf %14, %15 : vector<64x128xf32>
    %17 = arith.mulf %16, %16 : vector<64x128xf32>
    %18 = arith.addf %11, %17 : vector<64x128xf32>
    %19 = vector.extract_strided_slice %8 {offsets = [0, 1], sizes = [64, 1], strides = [1, 1]} : vector<64x6xf32> to vector<64x1xf32>
    %20 = vector.extract_strided_slice %3 {offsets = [1, 0], sizes = [1, 128], strides = [1, 1]} : vector<6x128xf32> to vector<1x128xf32>
    %21 = vector.broadcast %19 : vector<64x1xf32> to vector<64x128xf32>
    %22 = vector.broadcast %20 : vector<1x128xf32> to vector<64x128xf32>
    %23 = arith.subf %21, %22 : vector<64x128xf32>
    %24 = arith.mulf %23, %23 : vector<64x128xf32>
    %25 = arith.addf %18, %24 : vector<64x128xf32>
    %26 = vector.extract_strided_slice %8 {offsets = [0, 2], sizes = [64, 1], strides = [1, 1]} : vector<64x6xf32> to vector<64x1xf32>
    %27 = vector.extract_strided_slice %3 {offsets = [2, 0], sizes = [1, 128], strides = [1, 1]} : vector<6x128xf32> to vector<1x128xf32>
    %28 = vector.broadcast %26 : vector<64x1xf32> to vector<64x128xf32>
    %29 = vector.broadcast %27 : vector<1x128xf32> to vector<64x128xf32>
    %30 = arith.subf %28, %29 : vector<64x128xf32>
    %31 = arith.mulf %30, %30 : vector<64x128xf32>
    %32 = arith.addf %25, %31 : vector<64x128xf32>
    %33 = math.sqrt %32 : vector<64x128xf32>
    %34 = vector.broadcast %1 : f32 to vector<64x128xf32>
    %35 = arith.mulf %34, %33 : vector<64x128xf32>
    %36 = vector.broadcast %0 : f32 to vector<64x128xf32>
    %37 = arith.addf %36, %35 : vector<64x128xf32>
    %38 = tpu.reciprocal %37 {approx = true} : vector<64x128xf32> -> vector<64x128xf32>
    %39 = arith.mulf %37, %38 : vector<64x128xf32>
    %cst_7 = arith.constant 2.000000e+00 : f32
    %40 = vector.broadcast %cst_7 : f32 to vector<64x128xf32>
    %41 = arith.subf %40, %39 : vector<64x128xf32>
    %42 = arith.mulf %38, %41 : vector<64x128xf32>
    %43 = arith.mulf %10, %42 : vector<64x128xf32>
    %44 = arith.addf %9, %43 : vector<64x128xf32>
    %cst_8 = arith.constant 0.000000e+00 : f32
    %45 = vector.broadcast %cst_8 : f32 to vector<64x128xf32>
    %46 = vector.extract_strided_slice %8 {offsets = [0, 3], sizes = [64, 1], strides = [1, 1]} : vector<64x6xf32> to vector<64x1xf32>
    %47 = vector.extract_strided_slice %3 {offsets = [3, 0], sizes = [1, 128], strides = [1, 1]} : vector<6x128xf32> to vector<1x128xf32>
    %48 = vector.broadcast %46 : vector<64x1xf32> to vector<64x128xf32>
    %49 = vector.broadcast %47 : vector<1x128xf32> to vector<64x128xf32>
    %50 = arith.subf %48, %49 : vector<64x128xf32>
    %51 = arith.mulf %50, %50 : vector<64x128xf32>
    %52 = arith.addf %45, %51 : vector<64x128xf32>
    %53 = vector.extract_strided_slice %8 {offsets = [0, 4], sizes = [64, 1], strides = [1, 1]} : vector<64x6xf32> to vector<64x1xf32>
    %54 = vector.extract_strided_slice %3 {offsets = [4, 0], sizes = [1, 128], strides = [1, 1]} : vector<6x128xf32> to vector<1x128xf32>
    %55 = vector.broadcast %53 : vector<64x1xf32> to vector<64x128xf32>
    %56 = vector.broadcast %54 : vector<1x128xf32> to vector<64x128xf32>
    %57 = arith.subf %55, %56 : vector<64x128xf32>
    %58 = arith.mulf %57, %57 : vector<64x128xf32>
    %59 = arith.addf %52, %58 : vector<64x128xf32>
    %60 = vector.extract_strided_slice %8 {offsets = [0, 5], sizes = [64, 1], strides = [1, 1]} : vector<64x6xf32> to vector<64x1xf32>
    %61 = vector.extract_strided_slice %3 {offsets = [5, 0], sizes = [1, 128], strides = [1, 1]} : vector<6x128xf32> to vector<1x128xf32>
    %62 = vector.broadcast %60 : vector<64x1xf32> to vector<64x128xf32>
    %63 = vector.broadcast %61 : vector<1x128xf32> to vector<64x128xf32>
    %64 = arith.subf %62, %63 : vector<64x128xf32>
    %65 = arith.mulf %64, %64 : vector<64x128xf32>
    %66 = arith.addf %59, %65 : vector<64x128xf32>
    %67 = math.sqrt %66 : vector<64x128xf32>
    %68 = vector.broadcast %1 : f32 to vector<64x128xf32>
    %69 = arith.mulf %68, %67 : vector<64x128xf32>
    %70 = vector.broadcast %0 : f32 to vector<64x128xf32>
    %71 = arith.addf %70, %69 : vector<64x128xf32>
    %72 = tpu.reciprocal %71 {approx = true} : vector<64x128xf32> -> vector<64x128xf32>
    %73 = arith.mulf %71, %72 : vector<64x128xf32>
    %cst_9 = arith.constant 2.000000e+00 : f32
    %74 = vector.broadcast %cst_9 : f32 to vector<64x128xf32>
    %75 = arith.subf %74, %73 : vector<64x128xf32>
    %76 = arith.mulf %72, %75 : vector<64x128xf32>
    %77 = arith.mulf %43, %76 : vector<64x128xf32>
    %78 = arith.addf %44, %77 : vector<64x128xf32>
    %cst_10 = arith.constant 1.000000e+00 : f32
    %79 = vector.broadcast %cst_10 : f32 to vector<64x128xf32>
    %80 = arith.addf %79, %78 : vector<64x128xf32>
    %c0_11 = arith.constant 0 : index
    %81 = arith.index_cast %5 : i32 to index
    %c0_12 = arith.constant 0 : index
    %82 = vector.load %arg6[%c0_11, %81, %c0_12] : memref<1x128x128xf32, #tpu.memory_space<vmem>>, vector<1x64x128xf32>
    %83 = vector.shape_cast %82 : vector<1x64x128xf32> to vector<64x128xf32>
    %84 = vector.shape_cast %80 : vector<64x128xf32> to vector<1x64x128xf32>
    tpu.vector_store %arg6[%c0_11, %81, %c0_12], %84 {strides = array<i32>} : memref<1x128x128xf32, #tpu.memory_space<vmem>>, vector<1x64x128xf32>,
    %c1_i32 = arith.constant 1 : i32
    %c64_i32_13 = arith.constant 64 : i32
    %85 = arith.muli %c1_i32, %c64_i32_13 : i32
    %86 = tpu.assume_multiple %85, 64 : i32
    %c0_14 = arith.constant 0 : index
    %87 = arith.index_cast %86 : i32 to index
    %c0_15 = arith.constant 0 : index
    %88 = vector.load %arg4[%c0_14, %87, %c0_15] : memref<1x128x6xf32, #tpu.memory_space<vmem>>, vector<1x64x6xf32>
    %89 = vector.shape_cast %88 : vector<1x64x6xf32> to vector<64x6xf32>
    %cst_16 = arith.constant 0.000000e+00 : f32
    %90 = vector.broadcast %cst_16 : f32 to vector<64x128xf32>
    %cst_17 = arith.constant 1.000000e+00 : f32
    %91 = vector.broadcast %cst_17 : f32 to vector<64x128xf32>
    %cst_18 = arith.constant 0.000000e+00 : f32
    %92 = vector.broadcast %cst_18 : f32 to vector<64x128xf32>
    %93 = vector.extract_strided_slice %89 {offsets = [0, 0], sizes = [64, 1], strides = [1, 1]} : vector<64x6xf32> to vector<64x1xf32>
    %94 = vector.extract_strided_slice %3 {offsets = [0, 0], sizes = [1, 128], strides = [1, 1]} : vector<6x128xf32> to vector<1x128xf32>
    %95 = vector.broadcast %93 : vector<64x1xf32> to vector<64x128xf32>
    %96 = vector.broadcast %94 : vector<1x128xf32> to vector<64x128xf32>
    %97 = arith.subf %95, %96 : vector<64x128xf32>
    %98 = arith.mulf %97, %97 : vector<64x128xf32>
    %99 = arith.addf %92, %98 : vector<64x128xf32>
    %100 = vector.extract_strided_slice %89 {offsets = [0, 1], sizes = [64, 1], strides = [1, 1]} : vector<64x6xf32> to vector<64x1xf32>
    %101 = vector.extract_strided_slice %3 {offsets = [1, 0], sizes = [1, 128], strides = [1, 1]} : vector<6x128xf32> to vector<1x128xf32>
    %102 = vector.broadcast %100 : vector<64x1xf32> to vector<64x128xf32>
    %103 = vector.broadcast %101 : vector<1x128xf32> to vector<64x128xf32>
    %104 = arith.subf %102, %103 : vector<64x128xf32>
    %105 = arith.mulf %104, %104 : vector<64x128xf32>
    %106 = arith.addf %99, %105 : vector<64x128xf32>
    %107 = vector.extract_strided_slice %89 {offsets = [0, 2], sizes = [64, 1], strides = [1, 1]} : vector<64x6xf32> to vector<64x1xf32>
    %108 = vector.extract_strided_slice %3 {offsets = [2, 0], sizes = [1, 128], strides = [1, 1]} : vector<6x128xf32> to vector<1x128xf32>
    %109 = vector.broadcast %107 : vector<64x1xf32> to vector<64x128xf32>
    %110 = vector.broadcast %108 : vector<1x128xf32> to vector<64x128xf32>
    %111 = arith.subf %109, %110 : vector<64x128xf32>
    %112 = arith.mulf %111, %111 : vector<64x128xf32>
    %113 = arith.addf %106, %112 : vector<64x128xf32>
    %114 = math.sqrt %113 : vector<64x128xf32>
    %115 = vector.broadcast %1 : f32 to vector<64x128xf32>
    %116 = arith.mulf %115, %114 : vector<64x128xf32>
    %117 = vector.broadcast %0 : f32 to vector<64x128xf32>
    %118 = arith.addf %117, %116 : vector<64x128xf32>
    %119 = tpu.reciprocal %118 {approx = true} : vector<64x128xf32> -> vector<64x128xf32>
    %120 = arith.mulf %118, %119 : vector<64x128xf32>
    %cst_19 = arith.constant 2.000000e+00 : f32
    %121 = vector.broadcast %cst_19 : f32 to vector<64x128xf32>
    %122 = arith.subf %121, %120 : vector<64x128xf32>
    %123 = arith.mulf %119, %122 : vector<64x128xf32>
    %124 = arith.mulf %91, %123 : vector<64x128xf32>
    %125 = arith.addf %90, %124 : vector<64x128xf32>
    %cst_20 = arith.constant 0.000000e+00 : f32
    %126 = vector.broadcast %cst_20 : f32 to vector<64x128xf32>
    %127 = vector.extract_strided_slice %89 {offsets = [0, 3], sizes = [64, 1], strides = [1, 1]} : vector<64x6xf32> to vector<64x1xf32>
    %128 = vector.extract_strided_slice %3 {offsets = [3, 0], sizes = [1, 128], strides = [1, 1]} : vector<6x128xf32> to vector<1x128xf32>
    %129 = vector.broadcast %127 : vector<64x1xf32> to vector<64x128xf32>
    %130 = vector.broadcast %128 : vector<1x128xf32> to vector<64x128xf32>
    %131 = arith.subf %129, %130 : vector<64x128xf32>
    %132 = arith.mulf %131, %131 : vector<64x128xf32>
    %133 = arith.addf %126, %132 : vector<64x128xf32>
    %134 = vector.extract_strided_slice %89 {offsets = [0, 4], sizes = [64, 1], strides = [1, 1]} : vector<64x6xf32> to vector<64x1xf32>
    %135 = vector.extract_strided_slice %3 {offsets = [4, 0], sizes = [1, 128], strides = [1, 1]} : vector<6x128xf32> to vector<1x128xf32>
    %136 = vector.broadcast %134 : vector<64x1xf32> to vector<64x128xf32>
    %137 = vector.broadcast %135 : vector<1x128xf32> to vector<64x128xf32>
    %138 = arith.subf %136, %137 : vector<64x128xf32>
    %139 = arith.mulf %138, %138 : vector<64x128xf32>
    %140 = arith.addf %133, %139 : vector<64x128xf32>
    %141 = vector.extract_strided_slice %89 {offsets = [0, 5], sizes = [64, 1], strides = [1, 1]} : vector<64x6xf32> to vector<64x1xf32>
    %142 = vector.extract_strided_slice %3 {offsets = [5, 0], sizes = [1, 128], strides = [1, 1]} : vector<6x128xf32> to vector<1x128xf32>
    %143 = vector.broadcast %141 : vector<64x1xf32> to vector<64x128xf32>
    %144 = vector.broadcast %142 : vector<1x128xf32> to vector<64x128xf32>
    %145 = arith.subf %143, %144 : vector<64x128xf32>
    %146 = arith.mulf %145, %145 : vector<64x128xf32>
    %147 = arith.addf %140, %146 : vector<64x128xf32>
    %148 = math.sqrt %147 : vector<64x128xf32>
    %149 = vector.broadcast %1 : f32 to vector<64x128xf32>
    %150 = arith.mulf %149, %148 : vector<64x128xf32>
    %151 = vector.broadcast %0 : f32 to vector<64x128xf32>
    %152 = arith.addf %151, %150 : vector<64x128xf32>
    %153 = tpu.reciprocal %152 {approx = true} : vector<64x128xf32> -> vector<64x128xf32>
    %154 = arith.mulf %152, %153 : vector<64x128xf32>
    %cst_21 = arith.constant 2.000000e+00 : f32
    %155 = vector.broadcast %cst_21 : f32 to vector<64x128xf32>
    %156 = arith.subf %155, %154 : vector<64x128xf32>
    %157 = arith.mulf %153, %156 : vector<64x128xf32>
    %158 = arith.mulf %124, %157 : vector<64x128xf32>
    %159 = arith.addf %125, %158 : vector<64x128xf32>
    %cst_22 = arith.constant 1.000000e+00 : f32
    %160 = vector.broadcast %cst_22 : f32 to vector<64x128xf32>
    %161 = arith.addf %160, %159 : vector<64x128xf32>
    %c0_23 = arith.constant 0 : index
    %162 = arith.index_cast %86 : i32 to index
    %c0_24 = arith.constant 0 : index
    %163 = vector.load %arg6[%c0_23, %162, %c0_24] : memref<1x128x128xf32, #tpu.memory_space<vmem>>, vector<1x64x128xf32>
    %164 = vector.shape_cast %163 : vector<1x64x128xf32> to vector<64x128xf32>
    %165 = vector.shape_cast %161 : vector<64x128xf32> to vector<1x64x128xf32>
    tpu.vector_store %arg6[%c0_23, %162, %c0_24], %165 {strides = array<i32>} : memref<1x128x128xf32, #tpu.memory_space<vmem>>, vector<1x64x128xf32>,
    %c2_i32 = arith.constant 2 : i32
    return
  }
  func.func @transform_0(%arg0: i32, %arg1: i32, %arg2: i32) -> i32 {
    %c0_i32 = arith.constant 0 : i32
    %c0_i32_0 = arith.constant 0 : i32
    return %c0_i32 : i32
  }
  func.func @transform_1(%arg0: i32, %arg1: i32, %arg2: i32) -> (i32, i32, i32) {
    %c0_i32 = arith.constant 0 : i32
    %c0_i32_0 = arith.constant 0 : i32
    return %arg0, %arg1, %c0_i32 : i32, i32, i32
  }
  func.func @transform_2(%arg0: i32, %arg1: i32, %arg2: i32) -> (i32, i32, i32) {
    %c0_i32 = arith.constant 0 : i32
    %c0_i32_0 = arith.constant 0 : i32
    return %arg0, %c0_i32, %arg2 : i32, i32, i32
  }
  func.func @transform_3(%arg0: i32, %arg1: i32, %arg2: i32) -> (i32, i32, i32) {
    %c0_i32 = arith.constant 0 : i32
    return %arg0, %arg1, %arg2 : i32, i32, i32
  }
}

</mosaic_0001>

<bundles_post_ra>
// kernel: tpu_custom_call.1
= control target key start
LH: loop header
LB: loop body
LE: loop exit
PB: predicated region body
PF: predicated region fallthrough
CT: control target
= control target key end

     0   :  { %8 = vsyncpa [#allocation4], 0  ;;  %s3222_s0 = inlined_call_operand.vmem [shape: f32[2], index: 0, kind: input, shape index: {}]   ;;  %s3223_s1 = inlined_call_operand.vmem [shape: f32[2,128,6], index: 1, kind: input, shape index: {}]   ;;  %s3224_s2 = inlined_call_operand.vmem [shape: f32[2,6,128], index: 2, kind: input, shape index: {}]   ;;  %s3225_s3 = inlined_call_operand.hbm [shape: f32[2,128,128], index: 3, kind: output, shape index: {}]  }
   0x1   :  { %9 = vsyncpa [#allocation3], 0 }
   0x2   :  { %11 = vsyncpa [#allocation3 + $0x1], 0  ;;  %s2148_s12 = smov 0   ;;  %s2150_s13 = smov 0  }
   0x3   :  { %s2152_s14 = smov 0   ;;  %s2154_s15 = smov 0  }
   0x4   :  { %s2156_s16 = smov 0   ;;  %s2158_s17 = smov 0  }
   0x5 LB: > { %s1753_s18 = sadd.s32 4294967295, %s2117_s17   ;;  %s1754_s19 = sadd.s32 4294967294, %s2117_s17   ;;  %s2117_s17 = sphi %s2158_s17, %s17_s17   ;;  %s2113_s16 = sphi %s2156_s16, %s3232_s16   ;;  %s2109_s15 = sphi %s2154_s15, %s3231_s15   ;;  %s2105_s14 = sphi %s2152_s14, %s3230_s14   ;;  %s2101_s13 = sphi %s2150_s13, %s3229_s13   ;;  %s2097_s12 = sphi %s2148_s12, %s3228_s12  }
   0x6   : > { %s36_s20 = sadd.s32 1, %s2113_s16  ;;  %s124_s21 = sadd.s32 1, %s2105_s14 }
   0x7   : > { %p38_p0 = scmp.ge.s32.totalorder %s36_s20, 2  ;;  %p134_p1 = scmp.ne.s32.totalorder %s2105_s14, %s2101_s13 }
   0x8   : > { %p135_p2 = scmp.eq.s32.totalorder %s1753_s18, 1  ;;  %p140_p3 = scmp.ne.s32.totalorder %s2101_s13, %s2097_s12 }
   0x9   : > { %s3234_s20 = smov (%p38_p0, %s36_s20), 0  ;;  %p141_p5 = scmp.eq.s32.totalorder %s1754_s19, 1 }
   0xa   : > { %p2188_p4 = por %p135_p2, %p134_p1  ;;  %s117_s23 = ssub.s32 %s2113_s16, %s3234_s20 }
   0xb   : > { %p1755_p6 = scmp.ge.s32.totalorder %s2117_s17, 1  ;;  %p122_p7 = scmp.eq.s32.totalorder %s117_s23, 0 }
   0xc   : > { %p2195_p8 = por %p141_p5, %p140_p3  ;;  %p148_p9 = scmp.lt.s32.totalorder %s2117_s17, 3 }
   0xd   : > { %s2201_s25 = scalar_select %p122_p7, %s2105_s14, %s124_s21  }
   0xe   : > { %p149_p10 = pnand %p1755_p6, %p148_p9  ;;  %p1802_p11 = scmp.eq.s32.totalorder %s1753_s18, 0 }
   0xf   : > { %s160_s28 = sshll.u32 %s3222_s0, 4  ;;  %s2119_s29 = smov [#allocation2]   ;;  %s161_s28 = int_to_ptr.vmem [resolvable:$true] %s160_s28 }
  0x10   : > { %p1794_p12 = pneg %p149_p10  ;;  %196 = sbr.rel (%p149_p10) target bundleno = 491 (0x1eb), region = 32 }
  0x12   : > { %p1795_p13 = pnand %p1802_p11, %p1794_p12 }
  0x14   : > { %1797 = dma.vmem_to_smem (!%p1795_p13), %s161_s28, 16, %s2119_s29, [#allocation4]  }
  0x15   : > { %2088 = dma.done.wait (%p1802_p11), [#allocation4], 16  }
  0x16   : > { %2090 = vsyncadd (%p1802_p11), [#allocation4], 4294967280 }
  0x17   : > { %203 = sfence }
  0x18   : > { %p234_p0 = scmp.lt.s32.totalorder %s2109_s15, 1  ;;  %v2120_v0 = vmov 0   ;;  %v2121_v9 = vmov 1   ;;  %v2122_v12 = vmov 2   ;;  %v2123_v13 = vmov 3   ;;  %s1764_s18 = sld [smem:[#allocation2 + $0x1]] }
  0x19   : > { %1864 = vset.pattern.permute.xlu2 %v2120_v0  ;;  %1863 = vset.pattern.permute.xlu1 %v2120_v0  ;;  %v2124_v15 = vmov 4   ;;  %v2125_v27 = vmov 5   ;;  %s251_s19 = sld [smem:[#allocation2]]  ;;  %s230_s21 = sand.u32 1, %s2101_s13  }
  0x1a   : > { %1862 = vset.pattern.permute.xlu0 %v2120_v0  ;;  %s2211_s30 = scalar_select %p234_p0, %s2109_s15, 1 }
  0x1b   : > { %s2675_s23 = sshll.u32 %s230_s21, 7  ;;  %s1787_s27 = sshll.u32 %s2109_s15, 7 }
  0x1c   : > { %s1786_s4 = sshll.u32 %s2211_s30, 7  ;;  %s1763_s8 = sshll.u32 %s2211_s30, 3 }
  0x1d   : > { %s2217_s7 = scalar_lea.vmem %s3223_s1, %s1786_s4  ;;  %s249_s11 = scalar_lea.vmem %s3224_s2, %s1763_s8 }
  0x1e   : > { %v2220_v1 = vld [vmem:[%s2217_s7 + $0x20] sm:$0xff]  ;;  %v2223_v2 = vld [vmem:[%s2217_s7 + $0x10] sm:$0xff]  ;;  %v2232_v4 = vld [vmem:[%s2217_s7 + $0x28] sm:$0xff]  ;;  %s2707_s26 = scalar_lea.vmem [#allocation5], %s2675_s23  ;;  %s1639_s30 = scalar_lea.hbm %s3225_s3, %s1787_s27 }
  0x1f   : > { %284 = vperm.xlu2 %1864, %v2220_v1   ;;  %274 = vperm.xlu1 %1863, %v2223_v2   ;;  %v2228_v3 = vld [vmem:[%s2217_s7] sm:$0xff]  ;;  %v2235_v5 = vld [vmem:[%s2217_s7 + $0x18] sm:$0xff]  ;;  %v2238_v6 = vld [vmem:[%s2217_s7 + $0x8] sm:$0xff]  ;;  %s1640_s4 = sshll.u32 %s2707_s26, 4  ;;  %s1642_s5 = sshll.u32 %s1639_s30, 4  ;;  %s1641_s4 = int_to_ptr.vmem [resolvable:$true] %s1640_s4  ;;  %s1643_s5 = int_to_ptr.hbm [resolvable:$true] %s1642_s5 }
  0x20   : > { %264 = vperm.xlu0 %1862, %v2228_v3   ;;  %v2244_v7 = vld [vmem:[%s2217_s7 + $0x38] sm:$0xff]  ;;  %v2247_v8 = vld [vmem:[%s2217_s7 + $0x30] sm:$0xff]  ;;  %v2254_v10 = vld [vmem:[%s2217_s7 + $0x48] sm:$0xff]  ;;  %s1625_s15 = scalar_lea.sflag [#allocation3], %s230_s21  ;;  %s2049_s6 = sshra.s32 %s1643_s5, 4  ;;  %s2050_s6 = int_to_ptr.hbm [resolvable:$true] %s2049_s6 }
  0x21   : > { %v2261_v11 = vld [vmem:[%s2217_s7 + $0x70] sm:$0xff]  ;;  %v2307_v18 = vld [vmem:[%s249_s11] sm:$0x3f]  ;;  %s2055_s10 = scalar_lea.hbm %s3225_s3, 256  ;;  %p2056_p5 = scmp.lt.s32.totalorder %s2050_s6, %s3225_s3 }
  0x22   : > { %v2311_v19 = vperm.slane %v2307_v18, 1  ;;  %v2315_v21 = vperm.slane %v2307_v18, 0  ;;  %v2331_v44 = vperm.slane %v2307_v18, 2  ;;  %v2344_v53 = vld [vmem:[%s2217_s7 + $0x40] sm:$0xff] }
  0x27   : > { %289 = vperm.xlu2 %1864, %v2232_v4   ;;  %279 = vperm.xlu1 %1863, %v2235_v5  }
  0x28   : > { %269 = vperm.xlu0 %1862, %v2238_v6  }
  0x2f   : > { %1865 = vset.pattern.permute.xlu2 %v2121_v9  ;;  %299 = vperm.xlu1 %1863, %v2244_v7  }
  0x30   : > { %294 = vperm.xlu0 %1862, %v2247_v8   ;;  %328 = vperm.xlu2 %1865, %v2228_v3  }
  0x37   : > { %1866 = vset.pattern.permute.xlu1 %v2121_v9 }
  0x38   : > { %958 = vperm.xlu0 %1862, %v2254_v10   ;;  %336 = vperm.xlu1 %1866, %v2223_v2  }
  0x39   : > { %340 = vperm.xlu2 %1865, %v2235_v5  }
  0x40   : > { %983 = vperm.xlu0 %1862, %v2261_v11   ;;  %344 = vperm.xlu1 %1866, %v2220_v1  }
  0x41   : > { %348 = vperm.xlu2 %1865, %v2232_v4  }
  0x48   : > { %1877 = vset.pattern.permute.xlu0 %v2121_v9  ;;  %356 = vperm.xlu1 %1866, %v2244_v7  }
  0x49   : > { %1867 = vset.pattern.permute.xlu2 %v2122_v12  ;;  %332 = vperm.xlu0 %1877, %v2238_v6  }
  0x4a   : > { %385 = vperm.xlu2 %1867, %v2228_v3  }
  0x50   : > { %1868 = vset.pattern.permute.xlu1 %v2122_v12 }
  0x51   : > { %352 = vperm.xlu0 %1877, %v2247_v8   ;;  %393 = vperm.xlu1 %1868, %v2223_v2  }
  0x52   : > { %397 = vperm.xlu2 %1867, %v2235_v5  }
  0x59   : > { %1020 = vperm.xlu0 %1877, %v2254_v10   ;;  %401 = vperm.xlu1 %1868, %v2220_v1  }
  0x5a   : > { %405 = vperm.xlu2 %1867, %v2232_v4  }
  0x61   : > { %1040 = vperm.xlu0 %1877, %v2261_v11   ;;  %413 = vperm.xlu1 %1868, %v2244_v7  }
  0x62   : > { %1869 = vset.pattern.permute.xlu2 %v2123_v13 }
  0x63   : > { %596 = vperm.xlu2 %1869, %v2228_v3  }
  0x69   : > { %1880 = vset.pattern.permute.xlu0 %v2122_v12  ;;  %1870 = vset.pattern.permute.xlu1 %v2123_v13 }
  0x6a   : > { %389 = vperm.xlu0 %1880, %v2238_v6   ;;  %604 = vperm.xlu1 %1870, %v2223_v2  }
  0x6b   : > { %608 = vperm.xlu2 %1869, %v2235_v5  }
  0x72   : > { %409 = vperm.xlu0 %1880, %v2247_v8   ;;  %612 = vperm.xlu1 %1870, %v2220_v1  }
  0x73   : > { %616 = vperm.xlu2 %1869, %v2232_v4  }
  0x79   : > { %v2290_v14 = vpop.permute.xlu2 %284 }
  0x7a   : > { %1076 = vperm.xlu0 %1880, %v2254_v10   ;;  %624 = vperm.xlu1 %1870, %v2244_v7   ;;  %v307_v62 = vsub.f32 %v2290_v14, %v2315_v21 }
  0x7b   : > { %1871 = vset.pattern.permute.xlu2 %v2124_v15 }
  0x7c   : > { %653 = vperm.xlu2 %1871, %v2228_v3   ;;  %v315_v14 = vmul.f32 %v307_v62, %v307_v62 }
  0x81   : > { %v290_v16 = vpop.permute.xlu2 %289 }
  0x82   : > { %1096 = vperm.xlu0 %1880, %v2261_v11   ;;  %1872 = vset.pattern.permute.xlu1 %v2124_v15  ;;  %v308_v31 = vsub.f32 %v290_v16, %v2315_v21 }
  0x83   : > { %661 = vperm.xlu1 %1872, %v2223_v2  }
  0x84   : > { %665 = vperm.xlu2 %1871, %v2235_v5   ;;  %v316_v37 = vmul.f32 %v308_v31, %v308_v31 }
  0x8a   : > { %1883 = vset.pattern.permute.xlu0 %v2123_v13  ;;  %v329_v17 = vpop.permute.xlu2 %328 }
  0x8b   : > { %600 = vperm.xlu0 %1883, %v2238_v6   ;;  %669 = vperm.xlu1 %1872, %v2220_v1   ;;  %v360_v20 = vsub.f32 %v329_v17, %v2311_v19 }
  0x8c   : > { %673 = vperm.xlu2 %1871, %v2232_v4  }
  0x8d   : > { %v368_v24 = vmul.f32 %v360_v20, %v360_v20 }
  0x91   : > { %v275_v22 = vpop.permute.xlu1 %274 }
  0x92   : > { %v265_v23 = vpop.permute.xlu0 %264  ;;  %v305_v50 = vsub.f32 %v275_v22, %v2315_v21 }
  0x93   : > { %v341_v25 = vpop.permute.xlu2 %340  ;;  %620 = vperm.xlu0 %1883, %v2247_v8   ;;  %681 = vperm.xlu1 %1872, %v2244_v7   ;;  %v303_v26 = vsub.f32 %v265_v23, %v2315_v21 }
  0x94   : > { %1873 = vset.pattern.permute.xlu2 %v2125_v27  ;;  %v363_v29 = vsub.f32 %v341_v25, %v2311_v19  ;;  %v313_v57 = vmul.f32 %v305_v50, %v305_v50 }
  0x95   : > { %v311_v28 = vmul.f32 %v303_v26, %v303_v26  ;;  %710 = vperm.xlu2 %1873, %v2228_v3   ;;  %v2362_v3 = vld [vmem:[%s2217_s7 + $0x58] sm:$0xff]  ;;  %v2375_v26 = vld [vmem:[%s2217_s7 + $0x60] sm:$0xff] }
  0x96   : > { %v371_v33 = vmul.f32 %v363_v29, %v363_v29 }
  0x97   : > { %v376_v30 = vadd.f32 %v368_v24, %v311_v28  ;;  %v2378_v28 = vld [vmem:[%s2217_s7 + $0x68] sm:$0xff] }
  0x99   : > { %v280_v32 = vpop.permute.xlu1 %279 }
  0x9a   : > { %v306_v34 = vsub.f32 %v280_v32, %v2315_v21  ;;  %v270_v35 = vpop.permute.xlu0 %269 }
  0x9b   : > { %v349_v36 = vpop.permute.xlu2 %348  ;;  %1284 = vperm.xlu0 %1883, %v2254_v10   ;;  %1874 = vset.pattern.permute.xlu1 %v2125_v27  ;;  %v304_v20 = vsub.f32 %v270_v35, %v2315_v21 }
  0x9c   : > { %v314_v38 = vmul.f32 %v306_v34, %v306_v34  ;;  %v365_v39 = vsub.f32 %v349_v36, %v2311_v19  ;;  %718 = vperm.xlu1 %1874, %v2223_v2   ;;  %v2359_v2 = vld [vmem:[%s2217_s7 + $0x50] sm:$0xff] }
  0x9d   : > { %722 = vperm.xlu2 %1873, %v2235_v5   ;;  %v312_v29 = vmul.f32 %v304_v20, %v304_v20 }
  0x9e   : > { %v379_v40 = vadd.f32 %v371_v33, %v314_v38  ;;  %v373_v41 = vmul.f32 %v365_v39, %v365_v39  ;;  %v2391_v39 = vld [vmem:[%s2217_s7 + $0x78] sm:$0xff]  ;;  %s2051_s7 = scalar_lea.hbm %s2050_s6, 128 }
  0x9f   : > { %p2052_p1 = scmp.ne.s32.totalorder %s2050_s6, %s2051_s7  ;;  %p2057_p6 = scmp.lt.s32.totalorder %s2055_s10, %s2051_s7 }
  0xa0   : > { %v381_v42 = vadd.f32 %v373_v41, %v316_v37 }
  0xa1   : > { %v300_v43 = vpop.permute.xlu1 %299  ;;  %p2053_p2 = pnand %p2052_p1, %p2188_p4  ;;  %p2058_p7 = por %p2057_p6, %p2056_p5 }
  0xa2   : > { %v295_v45 = vpop.permute.xlu0 %294  ;;  %v310_v24 = vsub.f32 %v300_v43, %v2315_v21 }
  0xa3   : > { %1304 = vperm.xlu0 %1883, %v2261_v11   ;;  %v309_v38 = vsub.f32 %v295_v45, %v2315_v21  ;;  %p2054_p3 = pneg %p2053_p2 }
  0xa4   : > { %v386_v46 = vpop.permute.xlu2 %385  ;;  %726 = vperm.xlu1 %1874, %v2220_v1   ;;  %v318_v33 = vmul.f32 %v310_v24, %v310_v24 }
  0xa5   : > { %v417_v47 = vsub.f32 %v386_v46, %v2331_v44  ;;  %730 = vperm.xlu2 %1873, %v2232_v4   ;;  %v317_v43 = vmul.f32 %v309_v38, %v309_v38  ;;  %p2059_p9 = pnand %p2058_p7, %p2054_p3 }
  0xa7   : > { %v425_v48 = vmul.f32 %v417_v47, %v417_v47 }
  0xa9   : > { %v2337_v49 = vadd.f32 %v425_v48, %v376_v30 }
  0xaa   : > { %v337_v51 = vpop.permute.xlu1 %336  ;;  %v2340_v52 = vpop.permute.xlu0 %958 }
  0xab   : > { %1886 = vset.pattern.permute.xlu0 %v2124_v15  ;;  %v362_v54 = vsub.f32 %v337_v51, %v2311_v19  ;;  %v992_v45 = vsub.f32 %v2340_v52, %v2315_v21  ;;  %1892 = vrsqrt.f32 %v2337_v49  ;;  %vm448_vm0 = vcmp.eq.f32.partialorder %v2337_v49, inf }
  0xac   : > { %v398_v55 = vpop.permute.xlu2 %397  ;;  %657 = vperm.xlu0 %1886, %v2238_v6   ;;  %738 = vperm.xlu1 %1874, %v2244_v7   ;;  %vm450_vm1 = vcmp.eq.f32.partialorder %v2337_v49, 0.0 }
  0xad   : > { %v420_v56 = vsub.f32 %v398_v55, %v2331_v44  ;;  %1875 = vset.pattern.permute.xlu2 %v2120_v0  ;;  %v370_v58 = vmul.f32 %v362_v54, %v362_v54 }
  0xae   : > { %953 = vperm.xlu2 %1875, %v2344_v53  }
  0xaf   : > { %v428_v59 = vmul.f32 %v420_v56, %v420_v56  ;;  %v378_v60 = vadd.f32 %v370_v58, %v313_v57  ;;  %v1000_v57 = vmul.f32 %v992_v45, %v992_v45 }
  0xb1   : > { %v2352_v61 = vadd.f32 %v428_v59, %v379_v40 }
  0xb2   : > { %v345_v63 = vpop.permute.xlu1 %344  ;;  %v2356_v1 = vpop.permute.xlu0 %983 }
  0xb3   : > { %v364_v4 = vsub.f32 %v345_v63, %v2311_v19  ;;  %v1893_v63 = vpop.eup %1892  ;;  %1894 = vrsqrt.f32 %v2352_v61  ;;  %vm484_vm2 = vcmp.eq.f32.partialorder %v2352_v61, inf  ;;  %vm486_vm3 = vcmp.eq.f32.partialorder %v2352_v61, 0.0 }
  0xb4   : > { %v406_v5 = vpop.permute.xlu2 %405  ;;  %677 = vperm.xlu0 %1886, %v2247_v8   ;;  %1876 = vset.pattern.permute.xlu1 %v2120_v0 }
  0xb5   : > { %v422_v7 = vsub.f32 %v406_v5, %v2331_v44  ;;  %963 = vperm.xlu1 %1876, %v2359_v2   ;;  %v372_v16 = vmul.f32 %v364_v4, %v364_v4  ;;  %v997_v4 = vsub.f32 %v2356_v1, %v2315_v21 }
  0xb6   : > { %968 = vperm.xlu2 %1875, %v2362_v3  }
  0xb7   : > { %v430_v17 = vmul.f32 %v422_v7, %v422_v7  ;;  %v380_v22 = vadd.f32 %v372_v16, %v315_v14  ;;  %v1005_v16 = vmul.f32 %v997_v4, %v997_v4 }
  0xb9   : > { %v2371_v23 = vadd.f32 %v430_v17, %v381_v42 }
  0xba   : > { %v357_v25 = vpop.permute.xlu1 %356 }
  0xbb   : > { %v333_v0 = vpop.permute.xlu0 %332  ;;  %v367_v30 = vsub.f32 %v357_v25, %v2311_v19  ;;  %1896 = vrsqrt.f32 %v2371_v23  ;;  %vm508_vm4 = vcmp.eq.f32.partialorder %v2371_v23, inf  ;;  %vm510_vm5 = vcmp.eq.f32.partialorder %v2371_v23, 0.0 }
  0xbc   : > { %1340 = vperm.xlu0 %1886, %v2254_v10   ;;  %v361_v31 = vsub.f32 %v333_v0, %v2311_v19 }
  0xbd   : > { %973 = vperm.xlu1 %1876, %v2375_v26   ;;  %v2384_v32 = vpop.permute.xlu2 %596  ;;  %v375_v34 = vmul.f32 %v367_v30, %v367_v30 }
  0xbe   : > { %v369_v35 = vmul.f32 %v361_v31, %v361_v31  ;;  %978 = vperm.xlu2 %1875, %v2378_v28   ;;  %v1895_v31 = vpop.eup %1894 }
  0xbf   : > { %v383_v36 = vadd.f32 %v375_v34, %v318_v33  ;;  %v478_v38 = vmul.f32 %v1895_v31, %v2352_v61 }
  0xc0   : > { %v2387_v37 = vadd.f32 %v369_v35, %v312_v29 }
  0xc3   : > { %v394_v40 = vpop.permute.xlu1 %393  ;;  %v353_v41 = vpop.permute.xlu0 %352 }
  0xc4   : > { %v419_v42 = vsub.f32 %v394_v40, %v2331_v44  ;;  %1360 = vperm.xlu0 %1886, %v2261_v11   ;;  %v366_v46 = vsub.f32 %v353_v41, %v2311_v19 }
  0xc5   : > { %988 = vperm.xlu1 %1876, %v2391_v39   ;;  %v2397_v47 = vpop.permute.xlu2 %608 }
  0xc6   : > { %v427_v48 = vmul.f32 %v419_v42, %v419_v42  ;;  %1878 = vset.pattern.permute.xlu2 %v2121_v9  ;;  %v374_v50 = vmul.f32 %v366_v46, %v366_v46 }
  0xc7   : > { %1016 = vperm.xlu2 %1878, %v2344_v53  }
  0xc8   : > { %v2403_v51 = vadd.f32 %v427_v48, %v378_v60  ;;  %v2406_v54 = vadd.f32 %v374_v50, %v317_v43  ;;  %v479_v43 = vmul.f32 %v1895_v31, %v478_v38  ;;  %v2452_v50 = vpop.eup %1896 }
  0xca   : > { %1898 = vrsqrt.f32 %v2403_v51  ;;  %vm472_vm6 = vcmp.eq.f32.partialorder %v2403_v51, inf  ;;  %vm474_vm9 = vcmp.eq.f32.partialorder %v2403_v51, 0.0 }
  0xcb   : > { %v402_v55 = vpop.permute.xlu1 %401  ;;  %v1021_v56 = vpop.permute.xlu0 %1020 }
  0xcc   : > { %v421_v58 = vsub.f32 %v402_v55, %v2331_v44  ;;  %1889 = vset.pattern.permute.xlu0 %v2125_v27  ;;  %v1048_v59 = vsub.f32 %v1021_v56, %v2311_v19  ;;  %v480_v55 = vmul.f32 0.5, %v479_v43 }
  0xcd   : > { %714 = vperm.xlu0 %1889, %v2238_v6   ;;  %1879 = vset.pattern.permute.xlu1 %v2121_v9  ;;  %v2413_v52 = vpop.permute.xlu2 %616  ;;  %v442_v6 = vmul.f32 %v1893_v63, %v2337_v49 }
  0xce   : > { %v429_v60 = vmul.f32 %v421_v58, %v421_v58  ;;  %v1056_v62 = vmul.f32 %v1048_v59, %v1048_v59  ;;  %1024 = vperm.xlu1 %1879, %v2359_v2  }
  0xcf   : > { %1028 = vperm.xlu2 %1878, %v2362_v3   ;;  %v443_v24 = vmul.f32 %v1893_v63, %v442_v6  ;;  %v2477_v6 = vstv %s1764_s18 }
  0xd0   : > { %v2419_v5 = vadd.f32 %v429_v60, %v380_v22  ;;  %v2421_v7 = vadd.f32 %v1056_v62, %v1000_v57  ;;  %v2462_v57 = vperm.slane %v2307_v18, 4  ;;  %v481_v60 = vsub.f32 1.5, %v480_v55  ;;  %v2499_v38 = vpop.eup %1898 }
  0xd1   : > { %v444_v30 = vmul.f32 0.5, %v443_v24  ;;  %v451_v62 = vand.u32 2147483648, %v2337_v49 }
  0xd2   : > { %1900 = vrsqrt.f32 %v2419_v5  ;;  %vm496_vm10 = vcmp.eq.f32.partialorder %v2419_v5, inf  ;;  %vm498_vm11 = vcmp.eq.f32.partialorder %v2419_v5, 0.0 }
  0xd3   : > { %v414_v14 = vpop.permute.xlu1 %413  ;;  %v1041_v9 = vpop.permute.xlu0 %1040 }
  0xd4   : > { %v424_v17 = vsub.f32 %v414_v14, %v2331_v44  ;;  %v1053_v20 = vsub.f32 %v1041_v9, %v2311_v19 }
  0xd5   : > { %734 = vperm.xlu0 %1889, %v2247_v8   ;;  %v445_v8 = vsub.f32 1.5, %v444_v30 }
  0xd6   : > { %v432_v25 = vmul.f32 %v424_v17, %v424_v17  ;;  %v1061_v1 = vmul.f32 %v1053_v20, %v1053_v20  ;;  %v654_v22 = vpop.permute.xlu2 %653  ;;  %1032 = vperm.xlu1 %1879, %v2375_v26  }
  0xd7   : > { %1036 = vperm.xlu2 %1878, %v2378_v28   ;;  %v446_v42 = vmul.f32 %v1893_v63, %v445_v8  ;;  %v685_v4 = vsub.f32 %v654_v22, %v2462_v57 }
  0xd8   : > { %v2430_v0 = vadd.f32 %v432_v25, %v383_v36  ;;  %v2432_v29 = vadd.f32 %v1061_v1, %v1005_v16 }
  0xd9   : > { %v447_v45 = vmul.f32 %v446_v42, %v2337_v49  ;;  %v693_v25 = vmul.f32 %v685_v4, %v685_v4 }
  0xda   : > { %vm532_vm14 = vcmp.eq.f32.partialorder %v2430_v0, inf }
  0xdc   : > { %v390_v33 = vpop.permute.xlu0 %389  ;;  %v2434_v34 = vpop.permute.xlu1 %604 }
  0xdd   : > { %v418_v35 = vsub.f32 %v390_v33, %v2331_v44  ;;  %1396 = vperm.xlu0 %1889, %v2254_v10  }
  0xde   : > { %v2439_v40 = vpop.permute.xlu2 %665  ;;  %1044 = vperm.xlu1 %1879, %v2391_v39  }
  0xdf   : > { %v426_v36 = vmul.f32 %v418_v35, %v418_v35  ;;  %1881 = vset.pattern.permute.xlu2 %v2122_v12 }
  0xe0   : > { %1072 = vperm.xlu2 %1881, %v2344_v53  }
  0xe1   : > { %v2446_v41 = vadd.f32 %v426_v36, %v2387_v37  ;;  %v2459_v37 = vperm.slane %v2307_v18, 3 }
  0xe3   : > { %v628_v63 = vsub.f32 %v2384_v32, %v2459_v37  ;;  %v482_v32 = vmul.f32 %v1895_v31, %v481_v60  ;;  %v487_v60 = vand.u32 2147483648, %v2352_v61 }
  0xe4   : > { %v410_v10 = vpop.permute.xlu0 %409  ;;  %v2448_v46 = vpop.permute.xlu1 %612 }
  0xe5   : > { %v423_v48 = vsub.f32 %v410_v10, %v2331_v44  ;;  %1416 = vperm.xlu0 %1889, %v2261_v11   ;;  %v502_v11 = vmul.f32 %v2452_v50, %v2371_v23  ;;  %v636_v24 = vmul.f32 %v628_v63, %v628_v63  ;;  %v483_v31 = vmul.f32 %v482_v32, %v2352_v61 }
  0xe6   : > { %v2455_v56 = vpop.permute.xlu2 %673  ;;  %1882 = vset.pattern.permute.xlu1 %v2122_v12  ;;  %v449_v12 = vsel %vm448_vm0, %v2337_v49, %v447_v45 }
  0xe7   : > { %v431_v58 = vmul.f32 %v423_v48, %v423_v48  ;;  %1080 = vperm.xlu1 %1882, %v2359_v2   ;;  %v452_v16 = vsel %vm450_vm1, %v451_v62, %v449_v12  ;;  %v503_v17 = vmul.f32 %v2452_v50, %v502_v11  ;;  %v701_v36 = vadd.f32 %v693_v25, %v636_v24 }
  0xe8   : > { %1084 = vperm.xlu2 %1881, %v2362_v3   ;;  %v538_v49 = vmul.f32 %v2477_v6, %v452_v16  ;;  %v631_v48 = vsub.f32 %v2397_v47, %v2459_v37  ;;  %v466_v11 = vmul.f32 %v2499_v38, %v2403_v51  ;;  %v688_v12 = vsub.f32 %v2439_v40, %v2462_v57  ;;  %v2518_v47 = vpop.eup %1900 }
  0xe9   : > { %v2470_v59 = vadd.f32 %v431_v58, %v2406_v54  ;;  %v2483_v54 = vperm.slane %v2307_v18, 5  ;;  %v2492_v18 = vstv %s251_s19  ;;  %v504_v33 = vmul.f32 0.5, %v503_v17 }
  0xea   : > { %v547_v42 = vadd.f32 %v2492_v18, %v538_v49  ;;  %v485_v58 = vsel %vm484_vm2, %v2352_v61, %v483_v31  ;;  %v639_v16 = vmul.f32 %v631_v48, %v631_v48  ;;  %v467_v40 = vmul.f32 %v2499_v38, %v466_v11 }
  0xeb   : > { %v505_v10 = vsub.f32 1.5, %v504_v33  ;;  %v488_v4 = vsel %vm486_vm3, %v487_v60, %v485_v58  ;;  %v696_v17 = vmul.f32 %v688_v12, %v688_v12  ;;  %v490_v61 = vmul.f32 %v2518_v47, %v2419_v5 }
  0xec   : > { %v1077_v14 = vpop.permute.xlu0 %1076  ;;  %v2480_v9 = vpop.permute.xlu1 %624  ;;  %v690_v24 = vsub.f32 %v2455_v56, %v2462_v57  ;;  %vm534_vm1 = vcmp.eq.f32.partialorder %v2430_v0, 0.0 }
  0xed   : > { %v1104_v20 = vsub.f32 %v1077_v14, %v2331_v44  ;;  %v506_v14 = vmul.f32 %v2452_v50, %v505_v10  ;;  %v541_v50 = vmul.f32 %v2477_v6, %v488_v4  ;;  %v704_v33 = vadd.f32 %v696_v17, %v639_v16 }
  0xee   : > { %v491_v56 = vmul.f32 %v2518_v47, %v490_v61 }
  0xef   : > { %v1112_v1 = vmul.f32 %v1104_v20, %v1104_v20  ;;  %v711_v22 = vpop.permute.xlu2 %710  ;;  %1088 = vperm.xlu1 %1882, %v2375_v26  }
  0xf0   : > { %v742_v30 = vsub.f32 %v711_v22, %v2483_v54  ;;  %1092 = vperm.xlu2 %1881, %v2378_v28   ;;  %v633_v22 = vsub.f32 %v2413_v52, %v2459_v37  ;;  %v698_v52 = vmul.f32 %v690_v24, %v690_v24  ;;  %v492_v4 = vmul.f32 0.5, %v491_v56 }
  0xf1   : > { %v2495_v35 = vadd.f32 %v1112_v1, %v2421_v7  ;;  %v507_v1 = vmul.f32 %v506_v14, %v2371_v23 }
  0xf2   : > { %v750_v8 = vmul.f32 %v742_v30, %v742_v30  ;;  %v468_v30 = vmul.f32 0.5, %v467_v40  ;;  %v641_v60 = vmul.f32 %v633_v22, %v633_v22 }
  0xf3   : > { %v509_v58 = vsel %vm508_vm4, %v2371_v23, %v507_v1 }
  0xf4   : > { %v1097_v43 = vpop.permute.xlu0 %1096  ;;  %v2505_v45 = vadd.f32 %v750_v8, %v701_v36  ;;  %v469_v12 = vsub.f32 1.5, %v468_v30  ;;  %v706_v14 = vadd.f32 %v698_v52, %v641_v60 }
  0xf5   : > { %v1109_v7 = vsub.f32 %v1097_v43, %v2331_v44  ;;  %v2508_v55 = vpop.permute.xlu1 %661 }
  0xf6   : > { %1902 = vrsqrt.f32 %v2505_v45  ;;  %vm773_vm7 = vcmp.eq.f32.partialorder %v2505_v45, inf  ;;  %v687_v56 = vsub.f32 %v2508_v55, %v2462_v57  ;;  %vm775_vm8 = vcmp.eq.f32.partialorder %v2505_v45, 0.0 }
  0xf7   : > { %v723_v62 = vpop.permute.xlu2 %722  ;;  %1100 = vperm.xlu1 %1882, %v2391_v39   ;;  %v1117_v63 = vmul.f32 %v1109_v7, %v1109_v7  ;;  %1904 = vrcp.f32 %v547_v42  ;;  %v550_v7 = vadd.f32 %v2492_v18, %v541_v50  ;;  %v470_v50 = vmul.f32 %v2499_v38, %v469_v12 }
  0xf8   : > { %1884 = vset.pattern.permute.xlu2 %v2123_v13  ;;  %v745_v32 = vsub.f32 %v723_v62, %v2483_v54  ;;  %1906 = vrsqrt.f32 %v2430_v0 }
  0xf9   : > { %1280 = vperm.xlu2 %1884, %v2344_v53   ;;  %v2526_v20 = vadd.f32 %v1117_v63, %v2432_v29  ;;  %v511_v63 = vand.u32 2147483648, %v2371_v23  ;;  %v493_v23 = vsub.f32 1.5, %v492_v4  ;;  %v471_v52 = vmul.f32 %v470_v50, %v2403_v51 }
  0xfa   : > { %v753_v8 = vmul.f32 %v745_v32, %v745_v32 }
  0xfb   : > { %v512_v32 = vsel %vm510_vm5, %v511_v63, %v509_v58  ;;  %v494_v12 = vmul.f32 %v2518_v47, %v493_v23 }
  0xfc   : > { %v1903_v25 = vpop.eup %1902  ;;  %v2546_v48 = vadd.f32 %v753_v8, %v704_v33  ;;  %v543_v33 = vmul.f32 %v2477_v6, %v512_v32 }
  0xfd   : > { %v2537_v49 = vpop.permute.xlu1 %669  ;;  %v2539_v29 = vpop.permute.xlu0 %600  ;;  %v767_v31 = vmul.f32 %v1903_v25, %v2505_v45 }
  0xfe   : > { %v1905_v36 = vpop.eup %1904  ;;  %1908 = vrsqrt.f32 %v2546_v48  ;;  %v2595_v4 = vadd.f32 %v2492_v18, %v543_v33  ;;  %vm809_vm12 = vcmp.eq.f32.partialorder %v2546_v48, inf  ;;  %vm811_vm13 = vcmp.eq.f32.partialorder %v2546_v48, 0.0 }
  0xff   : > { %v731_v43 = vpop.permute.xlu2 %730  ;;  %1885 = vset.pattern.permute.xlu1 %v2123_v13  ;;  %v768_v10 = vmul.f32 %v1903_v25, %v767_v31  ;;  %v563_v13 = vmul.f32 %v1905_v36, %v547_v42  ;;  %v2556_v17 = vpop.eup %1906  ;;  %1910 = vrcp.f32 %v550_v7 }
 0x100   : > { %1288 = vperm.xlu1 %1885, %v2359_v2   ;;  %v747_v11 = vsub.f32 %v731_v43, %v2483_v54  ;;  %v526_v31 = vmul.f32 %v2556_v17, %v2430_v0 }
 0x101   : > { %1292 = vperm.xlu2 %1884, %v2362_v3   ;;  %v769_v62 = vmul.f32 0.5, %v768_v10  ;;  %v571_v22 = vsub.f32 2.0, %v563_v13  ;;  %v630_v10 = vsub.f32 %v2434_v34, %v2459_v37  ;;  %v475_v13 = vand.u32 2147483648, %v2403_v51 }
 0x102   : > { %v755_v40 = vmul.f32 %v747_v11, %v747_v11  ;;  %v527_v63 = vmul.f32 %v2556_v17, %v526_v31 }
 0x103   : > { %v770_v16 = vsub.f32 1.5, %v769_v62  ;;  %v2589_v62 = vmul.f32 %v1905_v36, %v571_v22  ;;  %v473_v36 = vsel %vm472_vm6, %v2403_v51, %v471_v52  ;;  %v638_v32 = vmul.f32 %v630_v10, %v630_v10 }
 0x104   : > { %v2563_v42 = vadd.f32 %v755_v40, %v706_v14  ;;  %v1909_v30 = vpop.eup %1908  ;;  %v495_v22 = vmul.f32 %v494_v12, %v2419_v5  ;;  %v476_v12 = vsel %vm474_vm9, %v475_v13, %v473_v36  ;;  %v812_v51 = vand.u32 2147483648, %v2546_v48 }
 0x105   : > { %v2558_v61 = vpop.permute.xlu1 %681  ;;  %v2560_v24 = vpop.permute.xlu0 %620  ;;  %v771_v1 = vmul.f32 %v1903_v25, %v770_v16  ;;  %v776_v25 = vand.u32 2147483648, %v2505_v45  ;;  %v803_v43 = vmul.f32 %v1909_v30, %v2546_v48  ;;  %vm462_vm9 = vcmp.eq.f32.partialorder %v2446_v41, 0.0 }
 0x106   : > { %1912 = vrsqrt.f32 %v2563_v42  ;;  %v2585_v11 = vpop.eup %1910  ;;  %vm833_vm15 = vcmp.eq.f32.partialorder %v2563_v42, inf  ;;  %vm835_vm0 = vcmp.eq.f32.partialorder %v2563_v42, 0.0 }
 0x107   : > { %v772_v8 = vmul.f32 %v771_v1, %v2505_v45  ;;  %v804_v60 = vmul.f32 %v1909_v30, %v803_v43  ;;  %v2601_v40 = vmul.f32 %v2585_v11, %v550_v7  ;;  %v499_v7 = vand.u32 2147483648, %v2419_v5 }
 0x108   : > { %1296 = vperm.xlu1 %1885, %v2375_v26   ;;  %v2572_v38 = vpop.permute.xlu2 %953 }
 0x109   : > { %1300 = vperm.xlu2 %1884, %v2378_v28   ;;  %v774_v58 = vsel %vm773_vm7, %v2505_v45, %v772_v8  ;;  %v695_v45 = vmul.f32 %v687_v56, %v687_v56  ;;  %v805_v14 = vmul.f32 0.5, %v804_v60  ;;  %v528_v8 = vmul.f32 0.5, %v527_v63 }
 0x10a   : > { %v777_v55 = vsel %vm775_vm8, %v776_v25, %v774_v58  ;;  %v574_v58 = vsub.f32 2.0, %v2601_v40  ;;  %vm460_vm8 = vcmp.eq.f32.partialorder %v2446_v41, inf }
 0x10b   : > { %v862_v34 = vmul.f32 %v777_v55, %v2477_v6  ;;  %v806_v23 = vsub.f32 1.5, %v805_v14  ;;  %v703_v56 = vadd.f32 %v695_v45, %v638_v32  ;;  %v689_v55 = vsub.f32 %v2537_v49, %v2462_v57 }
 0x10c   : > { %v1913_v47 = vpop.eup %1912  ;;  %v529_v45 = vsub.f32 1.5, %v528_v8  ;;  %v632_v14 = vsub.f32 %v2448_v46, %v2459_v37  ;;  %v540_v49 = vmul.f32 %v2477_v6, %v476_v12 }
 0x10d   : > { %v2598_v16 = vpop.permute.xlu0 %1284  ;;  %v870_v50 = vadd.f32 %v862_v34, %v2492_v18  ;;  %v827_v33 = vmul.f32 %v1913_v47, %v2563_v42  ;;  %v807_v43 = vmul.f32 %v1909_v30, %v806_v23  ;;  %v497_v30 = vsel %vm496_vm10, %v2419_v5, %v495_v22 }
 0x10e   : > { %v719_v1 = vpop.permute.xlu1 %718  ;;  %v500_v22 = vsel %vm498_vm11, %v499_v7, %v497_v30  ;;  %v697_v23 = vmul.f32 %v689_v55, %v689_v55  ;;  %v640_v5 = vmul.f32 %v632_v14, %v632_v14  ;;  %v635_v7 = vsub.f32 %v2480_v9, %v2459_v37 }
 0x10f   : > { %v744_v31 = vsub.f32 %v719_v1, %v2483_v54  ;;  %1914 = vrcp.f32 %v870_v50  ;;  %v828_v52 = vmul.f32 %v1913_v47, %v827_v33  ;;  %v808_v60 = vmul.f32 %v807_v43, %v2546_v48 }
 0x110   : > { %1308 = vperm.xlu1 %1885, %v2391_v39   ;;  %v2613_v25 = vpop.permute.xlu2 %968  ;;  %1916 = vrcp.f32 %v2595_v4  ;;  %v530_v43 = vmul.f32 %v2556_v17, %v529_v45  ;;  %v692_v55 = vsub.f32 %v2558_v61, %v2462_v57  ;;  %v705_v17 = vadd.f32 %v697_v23, %v640_v5 }
 0x111   : > { %v752_v10 = vmul.f32 %v744_v31, %v744_v31  ;;  %1887 = vset.pattern.permute.xlu2 %v2124_v15  ;;  %v829_v63 = vmul.f32 0.5, %v828_v52  ;;  %v810_v13 = vsel %vm809_vm12, %v2546_v48, %v808_v60  ;;  %1918 = vrsqrt.f32 %v2446_v41 }
 0x112   : > { %1336 = vperm.xlu2 %1887, %v2344_v53   ;;  %v813_v46 = vsel %vm811_vm13, %v812_v51, %v810_v13  ;;  %v836_v9 = vand.u32 2147483648, %v2563_v42  ;;  %v2667_v61 = vadd.f32 %v2492_v18, %v540_v49  ;;  %v531_v45 = vmul.f32 %v530_v43, %v2430_v0 }
 0x113   : > { %v2627_v34 = vadd.f32 %v752_v10, %v703_v56  ;;  %v830_v36 = vsub.f32 1.5, %v829_v63  ;;  %v865_v8 = vmul.f32 %v813_v46, %v2477_v6  ;;  %v542_v46 = vmul.f32 %v2477_v6, %v500_v22 }
 0x114   : > { %v535_v49 = vand.u32 2147483648, %v2430_v0  ;;  %v991_v5 = vsub.f32 %v2572_v38, %v2315_v21  ;;  %v533_v22 = vsel %vm532_vm14, %v2430_v0, %v531_v45  ;;  %vm520_vm10 = vcmp.eq.f32.partialorder %v2470_v59, inf }
 0x115   : > { %v2636_v32 = vpop.permute.xlu0 %1304  ;;  %v1915_v1 = vpop.eup %1914  ;;  %v831_v56 = vmul.f32 %v1913_v47, %v830_v36  ;;  %1920 = vrsqrt.f32 %v2627_v34  ;;  %v873_v12 = vadd.f32 %v865_v8, %v2492_v18  ;;  %v643_v8 = vmul.f32 %v635_v7, %v635_v7 }
 0x116   : > { %v727_v33 = vpop.permute.xlu1 %726  ;;  %v886_v31 = vmul.f32 %v1915_v1, %v870_v50  ;;  %v2644_v48 = vpop.eup %1916  ;;  %v536_v45 = vsel %vm534_vm1, %v535_v49, %v533_v22  ;;  %vm797_vm2 = vcmp.eq.f32.partialorder %v2627_v34, inf  ;;  %vm799_vm3 = vcmp.eq.f32.partialorder %v2627_v34, 0.0 }
 0x117   : > { %v746_v52 = vsub.f32 %v727_v33, %v2483_v54  ;;  %v832_v47 = vmul.f32 %v831_v56, %v2563_v42  ;;  %1922 = vrcp.f32 %v873_v12  ;;  %v2664_v63 = vpop.eup %1918  ;;  %v568_v7 = vmul.f32 %v2644_v48, %v2595_v4 }
 0x118   : > { %1888 = vset.pattern.permute.xlu1 %v2124_v15  ;;  %v2651_v10 = vpop.permute.xlu2 %978  ;;  %v894_v50 = vsub.f32 2.0, %v886_v31  ;;  %v454_v4 = vmul.f32 %v2664_v63, %v2446_v41  ;;  %v545_v40 = vmul.f32 %v2477_v6, %v536_v45  ;;  %vm522_vm11 = vcmp.eq.f32.partialorder %v2470_v59, 0.0 }
 0x119   : > { %1344 = vperm.xlu1 %1888, %v2359_v2   ;;  %v754_v15 = vmul.f32 %v746_v52, %v746_v52  ;;  %v834_v60 = vsel %vm833_vm15, %v2563_v42, %v832_v47  ;;  %vm1146_vm14 = vcmp.eq.f32.partialorder %v2495_v35, inf  ;;  %vm1148_vm15 = vcmp.eq.f32.partialorder %v2495_v35, 0.0 }
 0x11a   : > { %1348 = vperm.xlu2 %1887, %v2362_v3   ;;  %v902_v30 = vmul.f32 %v1915_v1, %v894_v50  ;;  %v837_v14 = vsel %vm835_vm0, %v836_v9, %v834_v60  ;;  %v700_v1 = vmul.f32 %v692_v55, %v692_v55  ;;  %v2700_v60 = vadd.f32 %v2492_v18, %v542_v46 }
 0x11b   : > { %v2670_v51 = vadd.f32 %v754_v15, %v705_v17  ;;  %v1921_v13 = vpop.eup %1920  ;;  %v867_v42 = vmul.f32 %v837_v14, %v2477_v6  ;;  %v582_v46 = vmul.f32 %v2585_v11, %v574_v58  ;;  %v455_v11 = vmul.f32 %v2664_v63, %v454_v4 }
 0x11c   : > { %v910_v36 = vmul.f32 %v902_v30, %v2589_v62  ;;  %v791_v23 = vmul.f32 %v1921_v13, %v2627_v34  ;;  %v708_v55 = vadd.f32 %v700_v1, %v643_v8 }
 0x11d   : > { %1924 = vrsqrt.f32 %v2670_v51  ;;  %v875_v43 = vadd.f32 %v867_v42, %v2492_v18  ;;  %v1923_v47 = vpop.eup %1922  ;;  %vm821_vm4 = vcmp.eq.f32.partialorder %v2670_v51, inf  ;;  %vm823_vm5 = vcmp.eq.f32.partialorder %v2670_v51, 0.0 }
 0x11e   : > { %v739_v33 = vpop.permute.xlu1 %738  ;;  %v2683_v31 = vpop.permute.xlu0 %657  ;;  %v918_v56 = vadd.f32 %v910_v36, %v2589_v62  ;;  %1926 = vrcp.f32 %v2667_v61  ;;  %v792_v52 = vmul.f32 %v1921_v13, %v791_v23  ;;  %v889_v38 = vmul.f32 %v1923_v47, %v873_v12 }
 0x11f   : > { %v749_v50 = vsub.f32 %v739_v33, %v2483_v54  ;;  %1928 = vrcp.f32 %v875_v43  ;;  %v999_v12 = vmul.f32 %v991_v5, %v991_v5  ;;  %v576_v33 = vsub.f32 2.0, %v568_v7 }
 0x120   : > { %v926_v62 = vadd.f32 1.0, %v918_v56  ;;  %v793_v9 = vmul.f32 0.5, %v792_v52  ;;  %v897_v36 = vsub.f32 2.0, %v889_v38  ;;  %1930 = vrsqrt.f32 %v2470_v59 }
 0x121   : > { %v1017_v17 = vpop.permute.xlu2 %1016  ;;  %1352 = vperm.xlu1 %1888, %v2375_v26   ;;  %v757_v15 = vmul.f32 %v749_v50, %v749_v50  ;;  %v584_v45 = vmul.f32 %v2644_v48, %v576_v33  ;;  %v2752_v33 = vadd.f32 %v2492_v18, %v545_v40 }
 0x122   : > { %v1047_v30 = vsub.f32 %v1017_v17, %v2311_v19  ;;  %1356 = vperm.xlu2 %1887, %v2378_v28   ;;  %934 = vst [vmem:[%s2707_s26] sm:$0xff] %v926_v62  ;;  %v794_v42 = vsub.f32 1.5, %v793_v9  ;;  %v905_v8 = vmul.f32 %v1923_v47, %v897_v36 }
 0x123   : > { %v1925_v14 = vpop.eup %1924  ;;  %v2710_v1 = vadd.f32 %v757_v15, %v708_v55  ;;  %v994_v55 = vsub.f32 %v2613_v25, %v2315_v21 }
 0x124   : > { %v1055_v23 = vmul.f32 %v1047_v30, %v1047_v30  ;;  %v815_v0 = vmul.f32 %v1925_v14, %v2670_v51  ;;  %v2717_v49 = vpop.eup %1926  ;;  %v795_v56 = vmul.f32 %v1921_v13, %v794_v42  ;;  %v913_v50 = vmul.f32 %v905_v8, %v582_v46 }
 0x125   : > { %1932 = vrsqrt.f32 %v2710_v1  ;;  %v1929_v22 = vpop.eup %1928  ;;  %v800_v13 = vand.u32 2147483648, %v2627_v34  ;;  %v2743_v4 = vmul.f32 %v2717_v49, %v2667_v61  ;;  %v456_v42 = vmul.f32 0.5, %v455_v11 }
 0x126   : > { %v2720_v5 = vpop.permute.xlu0 %677  ;;  %1934 = vrcp.f32 %v2700_v60  ;;  %v816_v58 = vmul.f32 %v1925_v14, %v815_v0  ;;  %v891_v62 = vmul.f32 %v1929_v22, %v875_v43  ;;  %v796_v7 = vmul.f32 %v795_v56, %v2627_v34  ;;  %v2738_v43 = vpop.eup %1930 }
 0x127   : > { %v2725_v52 = vpop.permute.xlu1 %963  ;;  %v2728_v47 = vadd.f32 %v1055_v23, %v999_v12  ;;  %v921_v9 = vadd.f32 %v913_v50, %v582_v46  ;;  %v1002_v8 = vmul.f32 %v994_v55, %v994_v55  ;;  %v824_v55 = vand.u32 2147483648, %v2670_v51 }
 0x128   : > { %v817_v17 = vmul.f32 0.5, %v816_v58  ;;  %v899_v15 = vsub.f32 2.0, %v891_v62  ;;  %v798_v30 = vsel %vm797_vm2, %v2627_v34, %v796_v7  ;;  %vm857_vm6 = vcmp.eq.f32.partialorder %v2710_v1, inf }
 0x129   : > { %v1029_v38 = vpop.permute.xlu2 %1028  ;;  %1364 = vperm.xlu1 %1888, %v2391_v39   ;;  %v801_v25 = vsel %vm799_vm3, %v800_v13, %v798_v30  ;;  %v929_v23 = vadd.f32 1.0, %v921_v9  ;;  %v457_v30 = vsub.f32 1.5, %v456_v42  ;;  %vm859_vm7 = vcmp.eq.f32.partialorder %v2710_v1, 0.0 }
 0x12a   : > { %1890 = vset.pattern.permute.xlu2 %v2125_v27  ;;  %v818_v12 = vsub.f32 1.5, %v817_v17  ;;  %v907_v46 = vmul.f32 %v1929_v22, %v899_v15  ;;  %v864_v34 = vmul.f32 %v801_v25, %v2477_v6  ;;  %v1050_v61 = vsub.f32 %v1029_v38, %v2311_v19 }
 0x12b   : > { %1392 = vperm.xlu2 %1890, %v2344_v53   ;;  %v1933_v36 = vpop.eup %1932  ;;  %v514_v53 = vmul.f32 %v2738_v43, %v2470_v59  ;;  %937 = vst [vmem:[%s2707_s26 + $0x18] sm:$0xff] %v929_v23  ;;  %vm1206_vm2 = vcmp.eq.f32.partialorder %v2526_v20, inf  ;;  %vm1208_vm3 = vcmp.eq.f32.partialorder %v2526_v20, 0.0 }
 0x12c   : > { %v2747_v0 = vpop.eup %1934  ;;  %v819_v56 = vmul.f32 %v1925_v14, %v818_v12  ;;  %v851_v48 = vmul.f32 %v1933_v36, %v2710_v1  ;;  %v915_v11 = vmul.f32 %v907_v46, %v584_v45  ;;  %v872_v22 = vadd.f32 %v864_v34, %v2492_v18 }
 0x12d   : > { %v996_v14 = vsub.f32 %v2651_v10, %v2315_v21  ;;  %v1058_v7 = vmul.f32 %v1050_v61, %v1050_v61  ;;  %v567_v10 = vmul.f32 %v2747_v0, %v2700_v60  ;;  %v515_v46 = vmul.f32 %v2738_v43, %v514_v53 }
 0x12e   : > { %v2758_v58 = vpop.permute.xlu0 %1340  ;;  %v820_v50 = vmul.f32 %v819_v56, %v2670_v51  ;;  %v852_v62 = vmul.f32 %v1933_v36, %v851_v48  ;;  %v923_v40 = vadd.f32 %v915_v11, %v584_v45  ;;  %1936 = vrcp.f32 %v872_v22 }
 0x12f   : > { %v2763_v13 = vpop.permute.xlu1 %973  ;;  %v2769_v9 = vadd.f32 %v1058_v7, %v1002_v8  ;;  %1938 = vrsqrt.f32 %v2495_v35  ;;  %v1004_v60 = vmul.f32 %v996_v14, %v996_v14  ;;  %v575_v56 = vsub.f32 2.0, %v567_v10 }
 0x130   : > { %v822_v17 = vsel %vm821_vm4, %v2670_v51, %v820_v50  ;;  %v853_v38 = vmul.f32 0.5, %v852_v62  ;;  %v931_v45 = vadd.f32 1.0, %v923_v40  ;;  %1940 = vrcp.f32 %v2752_v33 }
 0x131   : > { %v1037_v15 = vpop.permute.xlu2 %1036  ;;  %1891 = vset.pattern.permute.xlu1 %v2125_v27  ;;  %v825_v25 = vsel %vm823_vm5, %v824_v55, %v822_v17  ;;  %v458_v48 = vmul.f32 %v2664_v63, %v457_v30  ;;  %v686_v63 = vsub.f32 %v2683_v31, %v2462_v57  ;;  %v516_v14 = vmul.f32 0.5, %v515_v46 }
 0x132   : > { %1400 = vperm.xlu1 %1891, %v2359_v2   ;;  %v866_v12 = vmul.f32 %v825_v25, %v2477_v6  ;;  %v854_v23 = vsub.f32 1.5, %v853_v38  ;;  %v1052_v51 = vsub.f32 %v1037_v15, %v2311_v19  ;;  %939 = vst [vmem:[%s2707_s26 + $0x28] sm:$0xff] %v931_v45  ;;  %v573_v2 = vsub.f32 2.0, %v2743_v4 }
 0x133   : > { %1404 = vperm.xlu2 %1890, %v2362_v3   ;;  %v860_v4 = vand.u32 2147483648, %v2710_v1  ;;  %v459_v40 = vmul.f32 %v458_v48, %v2446_v41  ;;  %v583_v10 = vmul.f32 %v2747_v0, %v575_v56  ;;  %v463_v30 = vand.u32 2147483648, %v2446_v41 }
 0x134   : > { %v874_v27 = vadd.f32 %v866_v12, %v2492_v18  ;;  %v855_v42 = vmul.f32 %v1933_v36, %v854_v23  ;;  %v1060_v34 = vmul.f32 %v1052_v51, %v1052_v51  ;;  %v1937_v8 = vpop.eup %1936  ;;  %v629_v36 = vsub.f32 %v2539_v29, %v2459_v37 }
 0x135   : > { %v888_v3 = vmul.f32 %v1937_v8, %v872_v22  ;;  %v2800_v7 = vpop.eup %1938  ;;  %v581_v31 = vmul.f32 %v2717_v49, %v573_v2  ;;  %v694_v25 = vmul.f32 %v686_v63, %v686_v63  ;;  %v517_v23 = vsub.f32 1.5, %v516_v14 }
 0x136   : > { %v2785_v61 = vpop.permute.xlu0 %1360  ;;  %1942 = vrcp.f32 %v874_v27  ;;  %v856_v53 = vmul.f32 %v855_v42, %v2710_v1  ;;  %v2788_v11 = vadd.f32 %v1060_v34, %v1004_v60  ;;  %v637_v45 = vmul.f32 %v629_v36, %v629_v36 }
 0x137   : > { %v2790_v50 = vpop.permute.xlu1 %988  ;;  %v896_v62 = vsub.f32 2.0, %v888_v3  ;;  %v461_v46 = vsel %vm460_vm8, %v2446_v41, %v459_v40  ;;  %1944 = vrsqrt.f32 %v2526_v20  ;;  %v634_v60 = vsub.f32 %v2560_v24, %v2459_v37 }
 0x138   : > { %v858_v22 = vsel %vm857_vm6, %v2710_v1, %v856_v53  ;;  %v2810_v1 = vpop.eup %1940  ;;  %v702_v56 = vadd.f32 %v694_v25, %v637_v45  ;;  %v691_v48 = vsub.f32 %v2720_v5, %v2462_v57  ;;  %v518_v24 = vmul.f32 %v2738_v43, %v517_v23 }
 0x139   : > { %v861_v29 = vsel %vm859_vm7, %v860_v4, %v858_v22  ;;  %v904_v17 = vmul.f32 %v1937_v8, %v896_v62  ;;  %v464_v22 = vsel %vm462_vm9, %v463_v30, %v461_v46  ;;  %v1312_v23 = vsub.f32 %v2598_v16, %v2459_v37 }
 0x13a   : > { %v1073_v55 = vpop.permute.xlu2 %1072  ;;  %1408 = vperm.xlu1 %1891, %v2375_v26   ;;  %v869_v38 = vmul.f32 %v861_v29, %v2477_v6  ;;  %v699_v29 = vmul.f32 %v691_v48, %v691_v48  ;;  %v995_v16 = vsub.f32 %v2763_v13, %v2315_v21 }
 0x13b   : > { %v1103_v15 = vsub.f32 %v1073_v55, %v2331_v44  ;;  %1412 = vperm.xlu2 %1890, %v2378_v28   ;;  %v912_v26 = vmul.f32 %v904_v17, %v581_v31  ;;  %v1140_v28 = vmul.f32 %v2800_v7, %v2495_v35 }
 0x13c   : > { %v1943_v12 = vpop.eup %1942  ;;  %v877_v49 = vadd.f32 %v869_v38, %v2492_v18 }
 0x13d   : > { %v1111_v51 = vmul.f32 %v1103_v15, %v1103_v15  ;;  %v890_v0 = vmul.f32 %v1943_v12, %v874_v27  ;;  %v920_v42 = vadd.f32 %v912_v26, %v581_v31  ;;  %v570_v27 = vmul.f32 %v2810_v1, %v2752_v33  ;;  %v2842_v40 = vpop.eup %1944 }
 0x13e   : > { %1946 = vrcp.f32 %v877_v49  ;;  %v1141_v4 = vmul.f32 %v2800_v7, %v1140_v28  ;;  %v642_v33 = vmul.f32 %v634_v60, %v634_v60 }
 0x13f   : > { %v2824_v34 = vadd.f32 %v1111_v51, %v2728_v47  ;;  %v715_v8 = vpop.permute.xlu0 %714  ;;  %v898_v2 = vsub.f32 2.0, %v890_v0  ;;  %v928_v36 = vadd.f32 1.0, %v920_v42  ;;  %v993_v47 = vsub.f32 %v2725_v52, %v2315_v21 }
 0x140   : > { %v743_v3 = vsub.f32 %v715_v8, %v2483_v54  ;;  %v1025_v53 = vpop.permute.xlu1 %1024  ;;  %v578_v38 = vsub.f32 2.0, %v570_v27  ;;  %v1142_v30 = vmul.f32 0.5, %v1141_v4  ;;  %v707_v60 = vadd.f32 %v699_v29, %v642_v33 }
 0x141   : > { %v906_v63 = vmul.f32 %v1943_v12, %v898_v2  ;;  %v1049_v62 = vsub.f32 %v1025_v53, %v2311_v19  ;;  %936 = vst [vmem:[%s2707_s26 + $0x10] sm:$0xff] %v928_v36  ;;  %v1001_v41 = vmul.f32 %v993_v47, %v993_v47  ;;  %v1200_v12 = vmul.f32 %v2842_v40, %v2526_v20 }
 0x142   : > { %v751_v14 = vmul.f32 %v743_v3, %v743_v3  ;;  %v1085_v5 = vpop.permute.xlu2 %1084  ;;  %1420 = vperm.xlu1 %1891, %v2391_v39   ;;  %v519_v39 = vmul.f32 %v518_v24, %v2470_v59  ;;  %v539_v42 = vmul.f32 %v2477_v6, %v464_v22  ;;  %v523_v8 = vand.u32 2147483648, %v2470_v59 }
 0x143   : > { %v1106_v43 = vsub.f32 %v1085_v5, %v2331_v44  ;;  %v914_v52 = vmul.f32 %v906_v63, %v583_v10  ;;  %v1057_v31 = vmul.f32 %v1049_v62, %v1049_v62  ;;  %v1368_v2 = vsub.f32 %v2758_v58, %v2462_v57 }
 0x144   : > { %v2844_v55 = vadd.f32 %v751_v14, %v702_v56  ;;  %v1947_v17 = vpop.eup %1946  ;;  %v521_v27 = vsel %vm520_vm10, %v2470_v59, %v519_v39  ;;  %v1143_v24 = vsub.f32 1.5, %v1142_v30  ;;  %v1201_v36 = vmul.f32 %v2842_v40, %v1200_v12 }
 0x145   : > { %v1114_v15 = vmul.f32 %v1106_v43, %v1106_v43  ;;  %v922_v45 = vadd.f32 %v914_v52, %v583_v10  ;;  %v893_v25 = vmul.f32 %v1947_v17, %v877_v49  ;;  %v2853_v26 = vadd.f32 %v1057_v31, %v1001_v41 }
 0x146   : > { %1948 = vrsqrt.f32 %v2844_v55  ;;  %v1320_v4 = vmul.f32 %v1312_v23, %v1312_v23  ;;  %v1376_v14 = vmul.f32 %v1368_v2, %v1368_v2  ;;  %v1003_v62 = vmul.f32 %v995_v16, %v995_v16 }
 0x147   : > { %v2856_v51 = vadd.f32 %v1114_v15, %v2769_v9  ;;  %v735_v46 = vpop.permute.xlu0 %734  ;;  %v930_v28 = vadd.f32 1.0, %v922_v45  ;;  %v901_v0 = vsub.f32 2.0, %v893_v25  ;;  %v586_v9 = vmul.f32 %v2810_v1, %v578_v38 }
 0x148   : > { %v748_v10 = vsub.f32 %v735_v46, %v2483_v54  ;;  %v1033_v49 = vpop.permute.xlu1 %1032  ;;  %v548_v33 = vadd.f32 %v2492_v18, %v539_v42  ;;  %v524_v43 = vsel %vm522_vm11, %v523_v8, %v521_v27  ;;  %v1144_v29 = vmul.f32 %v2800_v7, %v1143_v24 }
 0x149   : > { %938 = vst [vmem:[%s2707_s26 + $0x20] sm:$0xff] %v930_v28  ;;  %v909_v56 = vmul.f32 %v1947_v17, %v901_v0  ;;  %v1051_v3 = vsub.f32 %v1033_v49, %v2311_v19  ;;  %v1202_v31 = vmul.f32 0.5, %v1201_v36  ;;  %v1317_v41 = vsub.f32 %v2636_v32, %v2459_v37 }
 0x14a   : > { %v756_v48 = vmul.f32 %v748_v10, %v748_v10  ;;  %v1093_v53 = vpop.permute.xlu2 %1092  ;;  %v998_v30 = vsub.f32 %v2790_v50, %v2315_v21  ;;  %v1384_v25 = vadd.f32 %v1376_v14, %v1320_v4  ;;  %v1373_v46 = vsub.f32 %v2785_v61, %v2462_v57 }
 0x14b   : > { %v1108_v58 = vsub.f32 %v1093_v53, %v2331_v44  ;;  %v917_v13 = vmul.f32 %v909_v56, %v586_v9  ;;  %v1059_v1 = vmul.f32 %v1051_v3, %v1051_v3  ;;  %v544_v32 = vmul.f32 %v2477_v6, %v524_v43 }
 0x14c   : > { %v1949_v47 = vpop.eup %1948  ;;  %v2873_v63 = vadd.f32 %v756_v48, %v707_v60  ;;  %v1145_v50 = vmul.f32 %v1144_v29, %v2495_v35  ;;  %v1203_v60 = vsub.f32 1.5, %v1202_v31  ;;  %v1006_v10 = vmul.f32 %v998_v30, %v998_v30 }
 0x14d   : > { %v779_v5 = vmul.f32 %v1949_v47, %v2844_v55  ;;  %v1116_v22 = vmul.f32 %v1108_v58, %v1108_v58  ;;  %v925_v52 = vadd.f32 %v917_v13, %v586_v9  ;;  %v2881_v38 = vadd.f32 %v1059_v1, %v1003_v62 }
 0x14e   : > { %1950 = vrsqrt.f32 %v2873_v63  ;;  %v1325_v42 = vmul.f32 %v1317_v41, %v1317_v41  ;;  %v1381_v61 = vmul.f32 %v1373_v46, %v1373_v46  ;;  %vm785_vm12 = vcmp.eq.f32.partialorder %v2844_v55, inf }
 0x14f   : > { %v780_v17 = vmul.f32 %v1949_v47, %v779_v5  ;;  %v1397_v39 = vpop.permute.xlu0 %1396  ;;  %v933_v15 = vadd.f32 1.0, %v925_v52  ;;  %v2888_v59 = vadd.f32 %v1116_v22, %v2788_v11  ;;  %1952 = vrcp.f32 %v548_v33 }
 0x150   : > { %v1045_v45 = vpop.permute.xlu1 %1044  ;;  %v1424_v7 = vsub.f32 %v1397_v39, %v2483_v54  ;;  %v788_v16 = vand.u32 2147483648, %v2844_v55  ;;  %vm787_vm13 = vcmp.eq.f32.partialorder %v2844_v55, 0.0  ;;  %v553_v53 = vadd.f32 %v2492_v18, %v544_v32 }
 0x151   : > { %v781_v12 = vmul.f32 0.5, %v780_v17  ;;  %v1054_v23 = vsub.f32 %v1045_v45, %v2311_v19  ;;  %941 = vst [vmem:[%s2707_s26 + $0x38] sm:$0xff] %v933_v15  ;;  %v1204_v24 = vmul.f32 %v2842_v40, %v1203_v60  ;;  %v1147_v4 = vsel %vm1146_vm14, %v2495_v35, %v1145_v50 }
 0x152   : > { %v1432_v0 = vmul.f32 %v1424_v7, %v1424_v7  ;;  %v1389_v13 = vadd.f32 %v1381_v61, %v1325_v42  ;;  %v1149_v62 = vand.u32 2147483648, %v2495_v35  ;;  %vm845_vm0 = vcmp.eq.f32.partialorder %v2873_v63, inf }
 0x153   : > { %v782_v28 = vsub.f32 1.5, %v781_v12  ;;  %v2896_v21 = vpop.permute.xlu2 %1280  ;;  %v1062_v49 = vmul.f32 %v1054_v23, %v1054_v23  ;;  %v1205_v17 = vmul.f32 %v1204_v24, %v2526_v20  ;;  %v848_v35 = vand.u32 2147483648, %v2873_v63 }
 0x154   : > { %v1951_v11 = vpop.eup %1950  ;;  %v2900_v2 = vadd.f32 %v1432_v0, %v1384_v25  ;;  %v1150_v31 = vsel %vm1148_vm15, %v1149_v62, %v1147_v4  ;;  %vm847_vm1 = vcmp.eq.f32.partialorder %v2873_v63, 0.0  ;;  %vm1134_vm8 = vcmp.eq.f32.partialorder %v2824_v34, inf }
 0x155   : > { %v783_v8 = vmul.f32 %v1949_v47, %v782_v28  ;;  %v839_v19 = vmul.f32 %v1951_v11, %v2873_v63  ;;  %v2904_v9 = vadd.f32 %v1062_v49, %v1006_v10  ;;  %v1953_v27 = vpop.eup %1952  ;;  %v1224_v25 = vmul.f32 %v1150_v31, %v2477_v6 }
 0x156   : > { %1954 = vrsqrt.f32 %v2900_v2  ;;  %v564_v40 = vmul.f32 %v1953_v27, %v548_v33  ;;  %v1209_v49 = vand.u32 2147483648, %v2526_v20  ;;  %vm1466_vm4 = vcmp.eq.f32.partialorder %v2900_v2, inf }
 0x157   : > { %v784_v56 = vmul.f32 %v783_v8, %v2844_v55  ;;  %v840_v48 = vmul.f32 %v1951_v11, %v839_v19  ;;  %v1417_v3 = vpop.permute.xlu0 %1416  ;;  %1956 = vrcp.f32 %v553_v53  ;;  %vm1468_vm5 = vcmp.eq.f32.partialorder %v2900_v2, 0.0 }
 0x158   : > { %v1429_v14 = vsub.f32 %v1417_v3, %v2483_v54  ;;  %v572_v0 = vsub.f32 2.0, %v564_v40  ;;  %vm1136_vm9 = vcmp.eq.f32.partialorder %v2824_v34, 0.0  ;;  %vm1170_vm10 = vcmp.eq.f32.partialorder %v2856_v51, inf }
 0x159   : > { %v786_v36 = vsel %vm785_vm12, %v2844_v55, %v784_v56  ;;  %v841_v58 = vmul.f32 0.5, %v840_v48  ;;  %v1081_v47 = vpop.permute.xlu1 %1080  ;;  %vm1172_vm11 = vcmp.eq.f32.partialorder %v2856_v51, 0.0  ;;  %vm1194_vm12 = vcmp.eq.f32.partialorder %v2888_v59, inf }
 0x15a   : > { %v789_v1 = vsel %vm787_vm13, %v788_v16, %v786_v36  ;;  %v1437_v55 = vmul.f32 %v1429_v14, %v1429_v14  ;;  %v1105_v52 = vsub.f32 %v1081_v47, %v2331_v44  ;;  %vm1196_vm13 = vcmp.eq.f32.partialorder %v2888_v59, 0.0 }
 0x15b   : > { %v863_v5 = vmul.f32 %v789_v1, %v2477_v6  ;;  %v842_v22 = vsub.f32 1.5, %v841_v58  ;;  %v2918_v43 = vpop.permute.xlu2 %1292  ;;  %v1469_v1 = vand.u32 2147483648, %v2900_v2 }
 0x15c   : > { %v1955_v29 = vpop.eup %1954  ;;  %v2926_v30 = vadd.f32 %v1437_v55, %v1389_v13  ;;  %v1113_v45 = vmul.f32 %v1105_v52, %v1105_v52 }
 0x15d   : > { %v871_v39 = vadd.f32 %v863_v5, %v2492_v18  ;;  %v843_v41 = vmul.f32 %v1951_v11, %v842_v22  ;;  %v1460_v15 = vmul.f32 %v1955_v29, %v2900_v2  ;;  %v1957_v46 = vpop.eup %1956  ;;  %v1207_v11 = vsel %vm1206_vm2, %v2526_v20, %v1205_v17 }
 0x15e   : > { %v2938_v60 = vadd.f32 %v1113_v45, %v2853_v26  ;;  %v1210_v56 = vsel %vm1208_vm3, %v1209_v49, %v1207_v11  ;;  %v580_v26 = vmul.f32 %v1953_v27, %v572_v0  ;;  %v569_v24 = vmul.f32 %v1957_v46, %v553_v53 }
 0x15f   : > { %1958 = vrcp.f32 %v871_v39  ;;  %v844_v33 = vmul.f32 %v843_v41, %v2873_v63  ;;  %v1461_v12 = vmul.f32 %v1955_v29, %v1460_v15  ;;  %v1229_v20 = vmul.f32 %v1210_v56, %v2477_v6 }
 0x160   : > { %1960 = vrsqrt.f32 %v2926_v30  ;;  %v577_v41 = vsub.f32 2.0, %v569_v24  ;;  %vm1526_vm6 = vcmp.eq.f32.partialorder %v2926_v30, inf  ;;  %vm1528_vm7 = vcmp.eq.f32.partialorder %v2926_v30, 0.0 }
 0x161   : > { %v846_v7 = vsel %vm845_vm0, %v2873_v63, %v844_v33  ;;  %v1089_v23 = vpop.permute.xlu1 %1088  ;;  %1962 = vrsqrt.f32 %v2824_v34  ;;  %v1462_v28 = vmul.f32 0.5, %v1461_v12  ;;  %v1232_v63 = vadd.f32 %v1224_v25, %v2492_v18 }
 0x162   : > { %v849_v32 = vsel %vm847_vm1, %v848_v35, %v846_v7  ;;  %v1107_v8 = vsub.f32 %v1089_v23, %v2331_v44  ;;  %v1237_v35 = vadd.f32 %v1229_v20, %v2492_v18  ;;  %vm1158_vm0 = vcmp.eq.f32.partialorder %v2938_v60, inf }
 0x163   : > { %v868_v50 = vmul.f32 %v849_v32, %v2477_v6  ;;  %v2940_v10 = vpop.permute.xlu2 %1300  ;;  %v1463_v42 = vsub.f32 1.5, %v1462_v28  ;;  %v585_v32 = vmul.f32 %v1957_v46, %v577_v41  ;;  %vm1160_vm3 = vcmp.eq.f32.partialorder %v2938_v60, 0.0 }
 0x164   : > { %v1115_v13 = vmul.f32 %v1107_v8, %v1107_v8 }
 0x165   : > { %v1959_v19 = vpop.eup %1958  ;;  %v876_v61 = vadd.f32 %v868_v50, %v2492_v18  ;;  %v1464_v3 = vmul.f32 %v1955_v29, %v1463_v42  ;;  %v1529_v50 = vand.u32 2147483648, %v2926_v30 }
 0x166   : > { %v1961_v16 = vpop.eup %1960  ;;  %v887_v48 = vmul.f32 %v1959_v19, %v871_v39  ;;  %v2957_v5 = vadd.f32 %v1115_v13, %v2881_v38 }
 0x167   : > { %1964 = vrcp.f32 %v876_v61  ;;  %v1520_v36 = vmul.f32 %v1961_v16, %v2926_v30  ;;  %v2948_v58 = vpop.eup %1962  ;;  %v1465_v4 = vmul.f32 %v1464_v3, %v2900_v2 }
 0x168   : > { %1966 = vrcp.f32 %v1232_v63  ;;  %v895_v47 = vsub.f32 2.0, %v887_v48  ;;  %v1128_v22 = vmul.f32 %v2948_v58, %v2824_v34 }
 0x169   : > { %v1521_v14 = vmul.f32 %v1961_v16, %v1520_v36  ;;  %v1101_v62 = vpop.permute.xlu1 %1100  ;;  %v1467_v53 = vsel %vm1466_vm4, %v2900_v2, %v1465_v4 }
 0x16a   : > { %v903_v27 = vmul.f32 %v1959_v19, %v895_v47  ;;  %v1470_v40 = vsel %vm1468_vm5, %v1469_v1, %v1467_v53  ;;  %v1110_v52 = vsub.f32 %v1101_v62, %v2331_v44  ;;  %v1129_v25 = vmul.f32 %v2948_v58, %v1128_v22 }
 0x16b   : > { %v1522_v55 = vmul.f32 0.5, %v1521_v14  ;;  %v1544_v31 = vmul.f32 %v1470_v40, %v2477_v6 }
 0x16c   : > { %v911_v29 = vmul.f32 %v903_v27, %v580_v26  ;;  %v2963_v17 = vpop.permute.xlu2 %1336  ;;  %v1118_v44 = vmul.f32 %v1110_v52, %v1110_v52  ;;  %v1130_v8 = vmul.f32 0.5, %v1129_v25 }
 0x16d   : > { %v1965_v39 = vpop.eup %1964  ;;  %v1523_v2 = vsub.f32 1.5, %v1522_v55  ;;  %v1552_v45 = vadd.f32 %v1544_v31, %v2492_v18 }
 0x16e   : > { %v1967_v38 = vpop.eup %1966  ;;  %v919_v15 = vadd.f32 %v911_v29, %v580_v26  ;;  %v892_v33 = vmul.f32 %v1965_v39, %v876_v61  ;;  %v2970_v0 = vadd.f32 %v1118_v44, %v2904_v9  ;;  %v1131_v24 = vsub.f32 1.5, %v1130_v8 }
 0x16f   : > { %v1524_v12 = vmul.f32 %v1961_v16, %v1523_v2  ;;  %1968 = vrcp.f32 %v1552_v45  ;;  %v1248_v42 = vmul.f32 %v1967_v38, %v1232_v63 }
 0x170   : > { %v927_v7 = vadd.f32 1.0, %v919_v15  ;;  %v900_v23 = vsub.f32 2.0, %v892_v33  ;;  %1970 = vrcp.f32 %v1237_v35  ;;  %v1132_v14 = vmul.f32 %v2948_v58, %v1131_v24 }
 0x171   : > { %v1525_v28 = vmul.f32 %v1524_v12, %v2926_v30  ;;  %1972 = vrsqrt.f32 %v2856_v51  ;;  %v1256_v26 = vsub.f32 2.0, %v1248_v42  ;;  %v1367_v58 = vsub.f32 %v2963_v17, %v2462_v57 }
 0x172   : > { %935 = vst [vmem:[%s2707_s26 + $0x8] sm:$0xff] %v927_v7  ;;  %v908_v11 = vmul.f32 %v1965_v39, %v900_v23  ;;  %v2976_v49 = vpop.permute.xlu1 %1288  ;;  %1974 = vrsqrt.f32 %v2888_v59  ;;  %v1133_v29 = vmul.f32 %v1132_v14, %v2824_v34  ;;  %v1137_v7 = vand.u32 2147483648, %v2824_v34 }
 0x173   : > { %v1527_v46 = vsel %vm1526_vm6, %v2926_v30, %v1525_v28  ;;  %v1264_v1 = vmul.f32 %v1967_v38, %v1256_v26  ;;  %vm1182_vm6 = vcmp.eq.f32.partialorder %v2957_v5, inf }
 0x174   : > { %v916_v19 = vmul.f32 %v908_v11, %v585_v32  ;;  %v1530_v61 = vsel %vm1528_vm7, %v1529_v50, %v1527_v46  ;;  %v1349_v9 = vpop.permute.xlu2 %1348  ;;  %v1135_v25 = vsel %vm1134_vm8, %v2824_v34, %v1133_v29  ;;  %v1314_v46 = vsub.f32 %v2918_v43, %v2459_v37 }
 0x175   : > { %v1549_v16 = vmul.f32 %v1530_v61, %v2477_v6  ;;  %v1969_v56 = vpop.eup %1968  ;;  %v1138_v28 = vsel %vm1136_vm9, %v1137_v7, %v1135_v25  ;;  %vm1184_vm7 = vcmp.eq.f32.partialorder %v2957_v5, 0.0  ;;  %vm1218_vm8 = vcmp.eq.f32.partialorder %v2970_v0, inf }
 0x176   : > { %v924_v48 = vadd.f32 %v916_v19, %v585_v32  ;;  %v1971_v3 = vpop.eup %1970  ;;  %v1568_v36 = vmul.f32 %v1969_v56, %v1552_v45  ;;  %v1375_v32 = vmul.f32 %v1367_v58, %v1367_v58  ;;  %v1223_v34 = vmul.f32 %v1138_v28, %v2477_v6 }
 0x177   : > { %v1557_v63 = vadd.f32 %v1549_v16, %v2492_v18  ;;  %v1973_v47 = vpop.eup %1972  ;;  %v1253_v30 = vmul.f32 %v1971_v3, %v1237_v35  ;;  %v1311_v35 = vsub.f32 %v2896_v21, %v2459_v37  ;;  %v1370_v16 = vsub.f32 %v1349_v9, %v2462_v57 }
 0x178   : > { %v932_v4 = vadd.f32 1.0, %v924_v48  ;;  %v1576_v13 = vsub.f32 2.0, %v1568_v36  ;;  %v1164_v62 = vmul.f32 %v1973_v47, %v2856_v51  ;;  %v1975_v53 = vpop.eup %1974  ;;  %v1231_v43 = vadd.f32 %v1223_v34, %v2492_v18 }
 0x179   : > { %1976 = vrcp.f32 %v1557_v63  ;;  %v1261_v55 = vsub.f32 2.0, %v1253_v30  ;;  %v1188_v39 = vmul.f32 %v1975_v53, %v2888_v59  ;;  %v1319_v23 = vmul.f32 %v1311_v35, %v1311_v35 }
 0x17a   : > { %940 = vst [vmem:[%s2707_s26 + $0x30] sm:$0xff] %v932_v4  ;;  %v2984_v20 = vpop.permute.xlu1 %1296  ;;  %v1584_v27 = vmul.f32 %v1969_v56, %v1576_v13  ;;  %v1165_v31 = vmul.f32 %v1973_v47, %v1164_v62  ;;  %1978 = vrsqrt.f32 %v2938_v60  ;;  %v1378_v4 = vmul.f32 %v1370_v16, %v1370_v16 }
 0x17b   : > { %v1269_v45 = vmul.f32 %v1971_v3, %v1261_v55  ;;  %v1189_v44 = vmul.f32 %v1975_v53, %v1188_v39  ;;  %v1383_v61 = vadd.f32 %v1375_v32, %v1319_v23  ;;  %v1316_v55 = vsub.f32 %v2940_v10, %v2459_v37 }
 0x17c   : > { %v1357_v22 = vpop.permute.xlu2 %1356  ;;  %v1592_v40 = vmul.f32 %v1584_v27, %v1264_v1  ;;  %v1166_v12 = vmul.f32 0.5, %v1165_v31  ;;  %v1173_v10 = vand.u32 2147483648, %v2856_v51 }
 0x17d   : > { %v1190_v8 = vmul.f32 0.5, %v1189_v44  ;;  %v1372_v27 = vsub.f32 %v1357_v22, %v2462_v57  ;;  %v1324_v58 = vmul.f32 %v1316_v55, %v1316_v55 }
 0x17e   : > { %v1600_v41 = vadd.f32 %v1592_v40, %v1264_v1  ;;  %v1167_v42 = vsub.f32 1.5, %v1166_v12 }
 0x17f   : > { %v1977_v52 = vpop.eup %1976  ;;  %v1191_v24 = vsub.f32 1.5, %v1190_v8 }
 0x180   : > { %v1573_v2 = vmul.f32 %v1977_v52, %v1557_v63  ;;  %v1608_v38 = vadd.f32 1.0, %v1600_v41  ;;  %v1168_v26 = vmul.f32 %v1973_v47, %v1167_v42  ;;  %v1322_v63 = vmul.f32 %v1314_v46, %v1314_v46  ;;  %v3010_v13 = vpop.eup %1978 }
 0x181   : > { %v1192_v14 = vmul.f32 %v1975_v53, %v1191_v24  ;;  %v1152_v47 = vmul.f32 %v3010_v13, %v2938_v60  ;;  %v1380_v41 = vmul.f32 %v1372_v27, %v1372_v27 }
 0x182   : > { %v1581_v15 = vsub.f32 2.0, %v1573_v2  ;;  %v2995_v33 = vpop.permute.xlu1 %1308  ;;  %1774 = vst [vmem:[%s2707_s26 + $0x48] sm:$0xff] %v1608_v38  ;;  %v1169_v1 = vmul.f32 %v1168_v26, %v2856_v51  ;;  %v1386_v62 = vadd.f32 %v1378_v4, %v1322_v63  ;;  %v1313_v4 = vsub.f32 %v2976_v49, %v2459_v37 }
 0x183   : > { %v1193_v53 = vmul.f32 %v1192_v14, %v2888_v59  ;;  %v1153_v22 = vmul.f32 %v3010_v13, %v1152_v47  ;;  %v1388_v7 = vadd.f32 %v1380_v41, %v1324_v58 }
 0x184   : > { %v1589_v21 = vmul.f32 %v1977_v52, %v1581_v15  ;;  %v1171_v31 = vsel %vm1170_vm10, %v2856_v51, %v1169_v1  ;;  %v1197_v51 = vand.u32 2147483648, %v2888_v59 }
 0x185   : > { %v1393_v17 = vpop.permute.xlu2 %1392  ;;  %v1174_v25 = vsel %vm1172_vm11, %v1173_v10, %v1171_v31  ;;  %v1195_v12 = vsel %vm1194_vm12, %v2888_v59, %v1193_v53  ;;  %v1154_v44 = vmul.f32 0.5, %v1153_v22  ;;  %vm1220_vm11 = vcmp.eq.f32.partialorder %v2970_v0, 0.0 }
 0x186   : > { %v1597_v11 = vmul.f32 %v1589_v21, %v1269_v45  ;;  %v1423_v50 = vsub.f32 %v1393_v17, %v2483_v54  ;;  %v1198_v8 = vsel %vm1196_vm13, %v1197_v51, %v1195_v12 }
 0x187   : > { %v1228_v24 = vmul.f32 %v1198_v8, %v2477_v6 }
 0x188   : > { %v1605_v19 = vadd.f32 %v1597_v11, %v1269_v45  ;;  %v1431_v56 = vmul.f32 %v1423_v50, %v1423_v50  ;;  %v1226_v11 = vmul.f32 %v1174_v25, %v2477_v6 }
 0x18a   : > { %v1613_v48 = vadd.f32 1.0, %v1605_v19  ;;  %v3007_v3 = vadd.f32 %v1431_v56, %v1383_v61  ;;  %v1155_v61 = vsub.f32 1.5, %v1154_v44  ;;  %v1234_v26 = vadd.f32 %v1226_v11, %v2492_v18 }
 0x18b   : > { %v1345_v36 = vpop.permute.xlu1 %1344 }
 0x18c   : > { %1779 = vst [vmem:[%s2707_s26 + $0x70] sm:$0xff] %v1613_v48  ;;  %1980 = vrsqrt.f32 %v3007_v3  ;;  %v1369_v59 = vsub.f32 %v1345_v36, %v2462_v57  ;;  %vm1454_vm14 = vcmp.eq.f32.partialorder %v3007_v3, inf  ;;  %vm1456_vm15 = vcmp.eq.f32.partialorder %v3007_v3, 0.0 }
 0x18d   : > { %v1405_v30 = vpop.permute.xlu2 %1404  ;;  %1982 = vrcp.f32 %v1231_v43 }
 0x18e   : > { %v1426_v9 = vsub.f32 %v1405_v30, %v2483_v54  ;;  %1984 = vrsqrt.f32 %v2957_v5 }
 0x190   : > { %v1434_v40 = vmul.f32 %v1426_v9, %v1426_v9  ;;  %v1156_v9 = vmul.f32 %v3010_v13, %v1155_v61  ;;  %v3070_v13 = vadd.f32 %v1228_v24, %v2492_v18 }
 0x192   : > { %v3022_v52 = vadd.f32 %v1434_v40, %v1386_v62  ;;  %v1981_v29 = vpop.eup %1980  ;;  %v1377_v62 = vmul.f32 %v1369_v59, %v1369_v59  ;;  %v1157_v53 = vmul.f32 %v1156_v9, %v2938_v60 }
 0x193   : > { %v3027_v39 = vpop.permute.xlu1 %1352  ;;  %v1448_v35 = vmul.f32 %v1981_v29, %v3007_v3  ;;  %v1983_v45 = vpop.eup %1982 }
 0x194   : > { %1986 = vrsqrt.f32 %v3022_v52  ;;  %v3037_v32 = vpop.eup %1984  ;;  %v1247_v28 = vmul.f32 %v1983_v45, %v1231_v43  ;;  %v1457_v43 = vand.u32 2147483648, %v3007_v3  ;;  %vm1490_vm1 = vcmp.eq.f32.partialorder %v3022_v52, inf }
 0x195   : > { %v1413_v2 = vpop.permute.xlu2 %1412  ;;  %v1449_v38 = vmul.f32 %v1981_v29, %v1448_v35  ;;  %1988 = vrsqrt.f32 %v2970_v0  ;;  %v1176_v16 = vmul.f32 %v3037_v32, %v2957_v5  ;;  %v1371_v25 = vsub.f32 %v3027_v39, %v2462_v57 }
 0x196   : > { %v1428_v15 = vsub.f32 %v1413_v2, %v2483_v54  ;;  %v1255_v48 = vsub.f32 2.0, %v1247_v28  ;;  %vm1492_vm2 = vcmp.eq.f32.partialorder %v3022_v52, 0.0  ;;  %v1159_v11 = vsel %vm1158_vm0, %v2938_v60, %v1157_v53 }
 0x197   : > { %v1450_v23 = vmul.f32 0.5, %v1449_v38  ;;  %v1177_v36 = vmul.f32 %v3037_v32, %v1176_v16 }
 0x198   : > { %v1436_v21 = vmul.f32 %v1428_v15, %v1428_v15  ;;  %v3065_v49 = vmul.f32 %v1983_v45, %v1255_v48  ;;  %v1493_v45 = vand.u32 2147483648, %v3022_v52 }
 0x199   : > { %v1451_v50 = vsub.f32 1.5, %v1450_v23  ;;  %v1178_v22 = vmul.f32 0.5, %v1177_v36 }
 0x19a   : > { %v1987_v17 = vpop.eup %1986  ;;  %v3042_v42 = vadd.f32 %v1436_v21, %v1388_v7 }
 0x19b   : > { %v1484_v46 = vmul.f32 %v1987_v17, %v3022_v52  ;;  %v3046_v19 = vpop.permute.xlu1 %1364  ;;  %v1452_v56 = vmul.f32 %v1981_v29, %v1451_v50  ;;  %v3063_v14 = vpop.eup %1988  ;;  %v1321_v29 = vmul.f32 %v1313_v4, %v1313_v4  ;;  %v1179_v21 = vsub.f32 1.5, %v1178_v22 }
 0x19c   : > { %1990 = vrsqrt.f32 %v3042_v42  ;;  %v1212_v41 = vmul.f32 %v3063_v14, %v2970_v0  ;;  %vm1514_vm4 = vcmp.eq.f32.partialorder %v3042_v42, inf  ;;  %vm1516_vm5 = vcmp.eq.f32.partialorder %v3042_v42, 0.0 }
 0x19d   : > { %v1485_v34 = vmul.f32 %v1987_v17, %v1484_v46  ;;  %v1453_v63 = vmul.f32 %v1452_v56, %v3007_v3  ;;  %1992 = vrcp.f32 %v1234_v26  ;;  %v1385_v2 = vadd.f32 %v1377_v62, %v1321_v29 }
 0x19e   : > { %v1213_v51 = vmul.f32 %v3063_v14, %v1212_v41  ;;  %v1379_v46 = vmul.f32 %v1371_v25, %v1371_v25 }
 0x19f   : > { %v1486_v30 = vmul.f32 0.5, %v1485_v34  ;;  %v1455_v1 = vsel %vm1454_vm14, %v3007_v3, %v1453_v63  ;;  %v1180_v34 = vmul.f32 %v3037_v32, %v1179_v21  ;;  %v1374_v32 = vsub.f32 %v3046_v19, %v2462_v57 }
 0x1a0   : > { %v1458_v47 = vsel %vm1456_vm15, %v1457_v43, %v1455_v1  ;;  %v1214_v48 = vmul.f32 0.5, %v1213_v51 }
 0x1a1   : > { %v1487_v27 = vsub.f32 1.5, %v1486_v30  ;;  %v1543_v55 = vmul.f32 %v1458_v47, %v2477_v6 }
 0x1a2   : > { %v1991_v40 = vpop.eup %1990 }
 0x1a3   : > { %v1488_v31 = vmul.f32 %v1987_v17, %v1487_v27  ;;  %v1508_v3 = vmul.f32 %v1991_v40, %v3042_v42  ;;  %v1551_v35 = vadd.f32 %v1543_v55, %v2492_v18  ;;  %v3085_v23 = vpop.eup %1992  ;;  %v1315_v17 = vsub.f32 %v2984_v20, %v2459_v37 }
 0x1a4   : > { %v1401_v10 = vpop.permute.xlu1 %1400  ;;  %v1250_v61 = vmul.f32 %v3085_v23, %v1234_v26  ;;  %v1517_v26 = vand.u32 2147483648, %v3042_v42  ;;  %v1181_v27 = vmul.f32 %v1180_v34, %v2957_v5 }
 0x1a5   : > { %v1489_v58 = vmul.f32 %v1488_v31, %v3022_v52  ;;  %v1509_v38 = vmul.f32 %v1991_v40, %v1508_v3  ;;  %v1425_v15 = vsub.f32 %v1401_v10, %v2483_v54  ;;  %1994 = vrcp.f32 %v1551_v35 }
 0x1a6   : > { %1996 = vrcp.f32 %v3070_v13  ;;  %v1323_v24 = vmul.f32 %v1315_v17, %v1315_v17  ;;  %v1258_v62 = vsub.f32 2.0, %v1250_v61  ;;  %v1318_v31 = vsub.f32 %v2995_v33, %v2459_v37 }
 0x1a7   : > { %v1491_v12 = vsel %vm1490_vm1, %v3022_v52, %v1489_v58  ;;  %v1510_v44 = vmul.f32 0.5, %v1509_v38  ;;  %v1433_v7 = vmul.f32 %v1425_v15, %v1425_v15  ;;  %v1161_v52 = vand.u32 2147483648, %v2938_v60 }
 0x1a8   : > { %v1494_v28 = vsel %vm1492_vm2, %v1493_v45, %v1491_v12  ;;  %v1387_v30 = vadd.f32 %v1379_v46, %v1323_v24  ;;  %v1382_v10 = vmul.f32 %v1374_v32, %v1374_v32  ;;  %v1183_v37 = vsel %vm1182_vm6, %v2957_v5, %v1181_v27 }
 0x1a9   : > { %v1546_v39 = vmul.f32 %v1494_v28, %v2477_v6  ;;  %v1511_v50 = vsub.f32 1.5, %v1510_v44  ;;  %v3094_v8 = vadd.f32 %v1433_v7, %v1385_v2  ;;  %v1162_v59 = vsel %vm1160_vm3, %v1161_v52, %v1159_v11 }
 0x1aa   : > { %v1326_v15 = vmul.f32 %v1318_v31, %v1318_v31  ;;  %v1185_v44 = vand.u32 2147483648, %v2957_v5  ;;  %v1266_v11 = vmul.f32 %v3085_v23, %v1258_v62 }
 0x1ab   : > { %v1554_v20 = vadd.f32 %v1546_v39, %v2492_v18  ;;  %v1512_v16 = vmul.f32 %v1991_v40, %v1511_v50  ;;  %1998 = vrsqrt.f32 %v3094_v8  ;;  %v1995_v56 = vpop.eup %1994  ;;  %v1215_v40 = vsub.f32 1.5, %v1214_v48 }
 0x1ac   : > { %v1409_v63 = vpop.permute.xlu1 %1408  ;;  %v1567_v4 = vmul.f32 %v1995_v56, %v1551_v35  ;;  %v3111_v47 = vpop.eup %1996  ;;  %v1390_v17 = vadd.f32 %v1382_v10, %v1326_v15  ;;  %vm1478_vm9 = vcmp.eq.f32.partialorder %v3094_v8, inf  ;;  %vm1480_vm10 = vcmp.eq.f32.partialorder %v3094_v8, 0.0 }
 0x1ad   : > { %2000 = vrcp.f32 %v1554_v20  ;;  %v1513_v43 = vmul.f32 %v1512_v16, %v3042_v42  ;;  %v1427_v60 = vsub.f32 %v1409_v63, %v2483_v54  ;;  %v1216_v33 = vmul.f32 %v3063_v14, %v1215_v40 }
 0x1ae   : > { %v1575_v9 = vsub.f32 2.0, %v1567_v4  ;;  %v1252_v14 = vmul.f32 %v3111_v47, %v3070_v13  ;;  %v1481_v63 = vand.u32 2147483648, %v3094_v8 }
 0x1af   : > { %v1515_v36 = vsel %vm1514_vm4, %v3042_v42, %v1513_v43  ;;  %v1435_v1 = vmul.f32 %v1427_v60, %v1427_v60  ;;  %v1225_v42 = vmul.f32 %v1162_v59, %v2477_v6  ;;  %v1217_v52 = vmul.f32 %v1216_v33, %v2970_v0 }
 0x1b0   : > { %v1518_v55 = vsel %vm1516_vm5, %v1517_v26, %v1515_v36  ;;  %v1583_v3 = vmul.f32 %v1995_v56, %v1575_v9  ;;  %v1260_v56 = vsub.f32 2.0, %v1252_v14  ;;  %v1221_v26 = vand.u32 2147483648, %v2970_v0 }
 0x1b1   : > { %v1999_v29 = vpop.eup %1998  ;;  %v1548_v53 = vmul.f32 %v1518_v55, %v2477_v6  ;;  %v3117_v22 = vadd.f32 %v1435_v1, %v1387_v30  ;;  %v3131_v12 = vadd.f32 %v1225_v42, %v2492_v18  ;;  %v1219_v24 = vsel %vm1218_vm8, %v2970_v0, %v1217_v52 }
 0x1b2   : > { %v1472_v57 = vmul.f32 %v1999_v29, %v3094_v8  ;;  %v1591_v41 = vmul.f32 %v1583_v3, %v3065_v49  ;;  %v1268_v32 = vmul.f32 %v3111_v47, %v1260_v56 }
 0x1b3   : > { %v2001_v19 = vpop.eup %2000  ;;  %v1556_v35 = vadd.f32 %v1548_v53, %v2492_v18  ;;  %2002 = vrsqrt.f32 %v3117_v22  ;;  %vm1502_vm12 = vcmp.eq.f32.partialorder %v3117_v22, inf  ;;  %vm1504_vm13 = vcmp.eq.f32.partialorder %v3117_v22, 0.0 }
 0x1b4   : > { %v1570_v2 = vmul.f32 %v2001_v19, %v1554_v20  ;;  %v1473_v58 = vmul.f32 %v1999_v29, %v1472_v57  ;;  %v1421_v38 = vpop.permute.xlu1 %1420  ;;  %v1599_v45 = vadd.f32 %v1591_v41, %v3065_v49  ;;  %v1186_v49 = vsel %vm1184_vm7, %v1185_v44, %v1183_v37 }
 0x1b5   : > { %2004 = vrcp.f32 %v1556_v35  ;;  %v1430_v25 = vsub.f32 %v1421_v38, %v2483_v54  ;;  %v1227_v23 = vmul.f32 %v1186_v49, %v2477_v6 }
 0x1b6   : > { %v1578_v7 = vsub.f32 2.0, %v1570_v2  ;;  %v1474_v21 = vmul.f32 0.5, %v1473_v58  ;;  %v1607_v51 = vadd.f32 1.0, %v1599_v45  ;;  %2006 = vrcp.f32 %v3131_v12 }
 0x1b7   : > { %v1438_v28 = vmul.f32 %v1430_v25, %v1430_v25  ;;  %v1235_v55 = vadd.f32 %v1227_v23, %v2492_v18 }
 0x1b8   : > { %v1586_v39 = vmul.f32 %v2001_v19, %v1578_v7  ;;  %v1475_v54 = vsub.f32 1.5, %v1474_v21  ;;  %1773 = vst [vmem:[%s2707_s26 + $0x40] sm:$0xff] %v1607_v51  ;;  %v1505_v19 = vand.u32 2147483648, %v3117_v22 }
 0x1b9   : > { %v2003_v50 = vpop.eup %2002  ;;  %v3141_v46 = vadd.f32 %v1438_v28, %v1390_v17 }
 0x1ba   : > { %v1594_v61 = vmul.f32 %v1586_v39, %v1266_v11  ;;  %v1476_v13 = vmul.f32 %v1999_v29, %v1475_v54  ;;  %v1496_v20 = vmul.f32 %v2003_v50, %v3117_v22  ;;  %v1222_v29 = vsel %vm1220_vm11, %v1221_v26, %v1219_v24 }
 0x1bb   : > { %v2005_v16 = vpop.eup %2004  ;;  %2008 = vrsqrt.f32 %v3141_v46  ;;  %v1230_v57 = vmul.f32 %v1222_v29, %v2477_v6  ;;  %vm1538_vm14 = vcmp.eq.f32.partialorder %v3141_v46, inf  ;;  %vm1540_vm15 = vcmp.eq.f32.partialorder %v3141_v46, 0.0 }
 0x1bc   : > { %v1602_v5 = vadd.f32 %v1594_v61, %v1266_v11  ;;  %v1572_v59 = vmul.f32 %v2005_v16, %v1556_v35  ;;  %v1477_v34 = vmul.f32 %v1476_v13, %v3094_v8  ;;  %v1497_v48 = vmul.f32 %v2003_v50, %v1496_v20  ;;  %v2007_v36 = vpop.eup %2006 }
 0x1bd   : > { %v1249_v37 = vmul.f32 %v2007_v36, %v3131_v12  ;;  %v1238_v15 = vadd.f32 %v1230_v57, %v2492_v18  ;;  %v1541_v12 = vand.u32 2147483648, %v3141_v46 }
 0x1be   : > { %v1610_v4 = vadd.f32 1.0, %v1602_v5  ;;  %v1580_v43 = vsub.f32 2.0, %v1572_v59  ;;  %v1479_v60 = vsel %vm1478_vm9, %v3094_v8, %v1477_v34  ;;  %v1498_v30 = vmul.f32 0.5, %v1497_v48 }
 0x1bf   : > { %v1482_v9 = vsel %vm1480_vm10, %v1481_v63, %v1479_v60  ;;  %v1257_v7 = vsub.f32 2.0, %v1249_v37 }
 0x1c0   : > { %1776 = vst [vmem:[%s2707_s26 + $0x58] sm:$0xff] %v1610_v4  ;;  %v1588_v1 = vmul.f32 %v2005_v16, %v1580_v43  ;;  %v1545_v62 = vmul.f32 %v1482_v9, %v2477_v6  ;;  %v1499_v27 = vsub.f32 1.5, %v1498_v30 }
 0x1c1   : > { %v2009_v40 = vpop.eup %2008  ;;  %v1265_v17 = vmul.f32 %v2007_v36, %v1257_v7 }
 0x1c2   : > { %v1596_v31 = vmul.f32 %v1588_v1, %v1268_v32  ;;  %v1553_v8 = vadd.f32 %v1545_v62, %v2492_v18  ;;  %v1500_v3 = vmul.f32 %v2003_v50, %v1499_v27  ;;  %v1532_v0 = vmul.f32 %v2009_v40, %v3141_v46 }
 0x1c4   : > { %v1604_v53 = vadd.f32 %v1596_v31, %v1268_v32  ;;  %2010 = vrcp.f32 %v1553_v8  ;;  %v1501_v47 = vmul.f32 %v1500_v3, %v3117_v22  ;;  %v1533_v42 = vmul.f32 %v2009_v40, %v1532_v0 }
 0x1c5   : > { %2012 = vrcp.f32 %v1235_v55 }
 0x1c6   : > { %v1612_v41 = vadd.f32 1.0, %v1604_v53  ;;  %v1503_v35 = vsel %vm1502_vm12, %v3117_v22, %v1501_v47  ;;  %v1534_v10 = vmul.f32 0.5, %v1533_v42 }
 0x1c7   : > { %v1506_v33 = vsel %vm1504_vm13, %v1505_v19, %v1503_v35 }
 0x1c8   : > { %1778 = vst [vmem:[%s2707_s26 + $0x68] sm:$0xff] %v1612_v41  ;;  %v1547_v2 = vmul.f32 %v1506_v33, %v2477_v6  ;;  %v1535_v58 = vsub.f32 1.5, %v1534_v10 }
 0x1ca   : > { %v2011_v38 = vpop.eup %2010  ;;  %v1555_v45 = vadd.f32 %v1547_v2, %v2492_v18  ;;  %v1536_v25 = vmul.f32 %v2009_v40, %v1535_v58 }
 0x1cb   : > { %v2013_v44 = vpop.eup %2012  ;;  %v1569_v21 = vmul.f32 %v2011_v38, %v1553_v8 }
 0x1cc   : > { %2014 = vrcp.f32 %v1555_v45  ;;  %v1537_v22 = vmul.f32 %v1536_v25, %v3141_v46  ;;  %v1251_v28 = vmul.f32 %v2013_v44, %v1235_v55 }
 0x1cd   : > { %v1577_v14 = vsub.f32 2.0, %v1569_v21  ;;  %2016 = vrcp.f32 %v1238_v15 }
 0x1ce   : > { %v1539_v51 = vsel %vm1538_vm14, %v3141_v46, %v1537_v22  ;;  %v1259_v61 = vsub.f32 2.0, %v1251_v28 }
 0x1cf   : > { %v1585_v11 = vmul.f32 %v2011_v38, %v1577_v14  ;;  %v1542_v49 = vsel %vm1540_vm15, %v1541_v12, %v1539_v51 }
 0x1d0   : > { %v1550_v39 = vmul.f32 %v1542_v49, %v2477_v6  ;;  %v1267_v23 = vmul.f32 %v2013_v44, %v1259_v61 }
 0x1d1   : > { %v1593_v54 = vmul.f32 %v1585_v11, %v1265_v17 }
 0x1d2   : > { %v2015_v50 = vpop.eup %2014  ;;  %v1558_v52 = vadd.f32 %v1550_v39, %v2492_v18 }
 0x1d3   : > { %v1601_v13 = vadd.f32 %v1593_v54, %v1265_v17  ;;  %v1571_v20 = vmul.f32 %v2015_v50, %v1555_v45  ;;  %v2017_v16 = vpop.eup %2016 }
 0x1d4   : > { %2018 = vrcp.f32 %v1558_v52  ;;  %v1254_v5 = vmul.f32 %v2017_v16, %v1238_v15 }
 0x1d5   : > { %v1609_v56 = vadd.f32 1.0, %v1601_v13  ;;  %v1579_v46 = vsub.f32 2.0, %v1571_v20 }
 0x1d6   : > { %v1262_v48 = vsub.f32 2.0, %v1254_v5 }
 0x1d7   : > { %1775 = vst [vmem:[%s2707_s26 + $0x50] sm:$0xff] %v1609_v56  ;;  %v1587_v59 = vmul.f32 %v2015_v50, %v1579_v46 }
 0x1d8   : > { %v1270_v43 = vmul.f32 %v2017_v16, %v1262_v48 }
 0x1d9   : > { %v1595_v34 = vmul.f32 %v1587_v59, %v1267_v23 }
 0x1da   : > { %v2019_v6 = vpop.eup %2018 }
 0x1db   : > { %v1603_v24 = vadd.f32 %v1595_v34, %v1267_v23  ;;  %v1574_v18 = vmul.f32 %v2019_v6, %v1558_v52 }
 0x1dd   : > { %v1611_v63 = vadd.f32 1.0, %v1603_v24  ;;  %v1582_v4 = vsub.f32 2.0, %v1574_v18 }
 0x1df   : > { %1777 = vst [vmem:[%s2707_s26 + $0x60] sm:$0xff] %v1611_v63  ;;  %v1590_v60 = vmul.f32 %v2019_v6, %v1582_v4 }
 0x1e1   : > { %v1598_v30 = vmul.f32 %v1590_v60, %v1270_v43 }
 0x1e3   : > { %v1606_v26 = vadd.f32 %v1598_v30, %v1270_v43 }
 0x1e5   : > { %v1614_v9 = vadd.f32 1.0, %v1606_v26 }
 0x1e7   : > { %1780 = vst [vmem:[%s2707_s26 + $0x78] sm:$0xff] %v1614_v9 }
 0x1e8   : > { %2062 = shalt.err (!%p2059_p9)
}
 0x1e9   : > { %s2126_s19 = smov 128   ;;  %s2127_s21 = smov 8  }
 0x1ea   : > { %1792 = dma.vmem_to_hbm [thread:$0]  (%p2188_p4), %s1641_s4, 2048, %s1643_s5, %s1625_s15, %s2126_s19, %s2126_s19, %s2127_s21  }
 0x1eb PF: > { %p1804_p10 = scmp.ge.s32.totalorder %s2117_s17, 2  ;;  %s1657_s23 = sand.u32 1, %s2097_s12  }
 0x1ec   : > { %s1658_s26 = scalar_lea.sflag [#allocation3], %s1657_s23 }
 0x1ed   : > { %p1799_p11 = pnand %p1804_p10, %p2195_p8 }
 0x1ef   : > { %p1800_p12 = pneg %p1799_p11 }
 0x1f1   : > { %2092 = dma.done.wait (%p1800_p12), %s1658_s26, 2048  }
 0x1f2   : > { %2094 = vsyncadd (%p1800_p12), %s1658_s26, 4294965248  ;;  %s17_s17 = sadd.s32 1, %s2117_s17   ;;  %s3228_s12 = smov %s2101_s13 }
 0x1f3   : > { %p14_p13 = scmp.ge.s32.totalorder %s17_s17, 4   ;;  %s3229_s13 = smov %s2105_s14 }
 0x1f4   : > { %s3230_s14 = smov %s2201_s25  ;;  %s3231_s15 = smov %s2113_s16 }
 0x1f5   : > { %s3232_s16 = smov %s3234_s20  ;;  %16 = sbr.rel (!%p14_p13) target bundleno = 5 (0x5), region = 77 }
 0x1fa   :  { %1664 = vsyncpa [#allocation3], 1 }
 0x1fb   :  { %1666 = vsyncpa [#allocation3 + $0x1], 1 }
 0x1fc   :  { %1667 = vsyncpa [#allocation4], 1 }
 0x1fd   :  { %1669 = vsyncpa [#allocation4 + $0x1], 1 }

</bundles_post_ra>
